<compile_context>
chip_gen: v6e
topology: v6e:2x2x1
jax: 0.10.0
libtpu: 0.0.40
codegen_flags: <defaults>
</compile_context>

<pallas_src>
import functools
import math

import jax
import jax.numpy as jnp
import numpy as np
from jax.experimental import pallas as pl
from jax.experimental.pallas import tpu as pltpu

BN_EPS = 1e-5
RELU6_MAX = 6.0


# ----------------------------- in-kernel helpers -----------------------------

def _rows_every2(v, off, n):
    """v: (A, B, C) -> (n, B, C), rows off, off+2, ..., off+2*(n-1).

    Built from unit slices + concatenate (avoids strided value slices)."""
    return jnp.concatenate(
        [v[off + 2 * i:off + 2 * i + 1] for i in range(n)], axis=0)


def _cols_every2(v, off, n):
    """v: (A, B, C) -> (A, n, C), cols off, off+2, ..., off+2*(n-1)."""
    return jnp.concatenate(
        [v[:, off + 2 * j:off + 2 * j + 1, :] for j in range(n)], axis=1)


# ----------------------------- fused Pallas kernel -----------------------------

def _fused_block_kernel(x_ref, w1_ref, b1_ref, wdw_ref, bdw_ref, w3_ref, b3_ref,
                        *rest, stride, mode):
    # rest = ([wp_ref, bp_ref,] o_ref, hpad_ref)
    if mode == "identity":
        o_ref, hpad_ref = rest
    else:
        wp_ref, bp_ref, o_ref, hpad_ref = rest

    Hp2, Wp2, hidden = hpad_ref.shape
    H, W = Hp2 - 2, Wp2 - 2
    oup = w3_ref.shape[1]
    Ho, Wo = H // stride, W // stride

    x2d = x_ref[0].astype(jnp.float32)                         # (H*W, Cin)

    # ---- expand 1x1 conv + folded BN (no activation, per reference) ----
    h = jnp.dot(x2d, w1_ref[...], preferred_element_type=jnp.float32) + b1_ref[...]

    # ---- stage hidden activation with a zero 1-px halo, VMEM only ----
    hpad_ref[...] = jnp.zeros_like(hpad_ref)
    hpad_ref[1:H + 1, 1:W + 1, :] = h.reshape(H, W, hidden)

    # ---- depthwise 3x3 (pad=1) + folded BN + ReLU6; stride handled in-kernel ----
    w33 = wdw_ref[...].astype(jnp.float32)                     # (3, 3, hidden)
    acc = jnp.zeros((H, W, hidden), jnp.float32)
    for dy in range(3):
        for dx in range(3):
            acc = acc + (hpad_ref[dy:dy + H, dx:dx + W, :]
                         * w33[dy:dy + 1, dx:dx + 1, :])
    if stride == 2:
        acc = _cols_every2(_rows_every2(acc, 0, Ho), 0, Wo)    # (Ho, Wo, hidden)
    hdw = jnp.clip(acc + bdw_ref[...], 0.0, RELU6_MAX)

    # ---- project 1x1 conv + folded BN + ReLU6 ----
    y = jnp.dot(hdw.reshape(Ho * Wo, hidden), w3_ref[...],
                preferred_element_type=jnp.float32) + b3_ref[...]
    y = jnp.clip(y, 0.0, RELU6_MAX)

    # ---- residual branch ----
    if mode == "identity":
        res = x2d                                              # inp == oup, stride 1
    else:
        proj = jnp.dot(x2d, wp_ref[...],
                       preferred_element_type=jnp.float32) + bp_ref[...]
        if mode == "proj":
            res = proj
        else:  # "pool": MaxPool2d(2, 2) of the projection (requires hidden == oup)
            p3 = proj.reshape(H, W, proj.shape[-1])
            rmax = jnp.maximum(_rows_every2(p3, 0, Ho), _rows_every2(p3, 1, Ho))
            res = jnp.maximum(_cols_every2(rmax, 0, Wo),
                              _cols_every2(rmax, 1, Wo)).reshape(Ho * Wo, oup)

    o_ref[0] = (y + res).astype(o_ref.dtype)


# ----------------------------- params & BN folding -----------------------------

def _kaiming(key, shape):
    fan_in = shape[1] * shape[2] * shape[3]
    return jax.random.normal(key, shape, jnp.float32) * math.sqrt(2.0 / fan_in)


def _bn_params(key, c):
    k1, k2, k3, k4 = jax.random.split(key, 4)
    gamma = 1.0 + 0.1 * jax.random.normal(k1, (c,), jnp.float32)
    beta = 0.1 * jax.random.normal(k2, (c,), jnp.float32)
    mean = 0.1 * jax.random.normal(k3, (c,), jnp.float32)
    var = 0.5 + jax.random.uniform(k4, (c,), jnp.float32)
    return gamma, beta, mean, var


def init_params(key, inp, oup, stride, expand_ratio):
    hidden = oup * expand_ratio
    ks = jax.random.split(key, 8)
    p = {
        "w1": _kaiming(ks[0], (hidden, inp, 1, 1)),   # expand 1x1
        "bn1": _bn_params(ks[1], hidden),
        "wdw": _kaiming(ks[2], (hidden, 1, 3, 3)),    # depthwise 3x3
        "bn2": _bn_params(ks[3], hidden),
        "w3": _kaiming(ks[4], (oup, hidden, 1, 1)),   # project 1x1
        "bn3": _bn_params(ks[5], oup),
    }
    use_proj_res = (stride == 1 and inp != oup)
    if use_proj_res:
        p["wp"] = _kaiming(ks[6], (oup, inp, 1, 1))
        p["bnp"] = _bn_params(ks[7], oup)
    elif stride == 2:
        p["wp"] = _kaiming(ks[6], (hidden, inp, 1, 1))
        p["bnp"] = _bn_params(ks[7], hidden)
    return p


def _fold_pointwise(w, bn):
    gamma, beta, mean, var = bn
    s = gamma / jnp.sqrt(var + BN_EPS)
    w2d = w[:, :, 0, 0] * s[:, None]                         # (cout, cin)
    return jnp.transpose(w2d), (beta - mean * s)[None, :]    # (cin, cout), (1, cout)


def _fold_depthwise(w, bn):
    gamma, beta, mean, var = bn
    s = gamma / jnp.sqrt(var + BN_EPS)
    wk = jnp.transpose(w[:, 0, :, :], (1, 2, 0)) * s         # (3, 3, C)
    return wk, (beta - mean * s)[None, None, :]              # (1, 1, C)


# ----------------------------- forward (Pallas) -----------------------------

def modified_residual_pallas(params, x_nchw, *, inp, oup, stride, expand_ratio):
    hidden = oup * expand_ratio
    use_res = (stride == 1 and inp == oup)
    use_proj_res = (stride == 1 and inp != oup)
    mode = "identity" if use_res else ("proj" if use_proj_res else "pool")

    N, _, H, W = x_nchw.shape
    if mode == "pool":
        assert hidden == oup, "stride-2 residual add requires expand_ratio == 1"
        assert H % 2 == 0 and W % 2 == 0, "stride-2 path assumes even H, W"
    Ho, Wo = H // stride, W // stride

    # NCHW -> NHWC -> flat pixels (single XLA pass over the small input tensor)
    x_flat = jnp.transpose(x_nchw, (0, 2, 3, 1)).astype(jnp.float32)
    x_flat = x_flat.reshape(N, H * W, inp)

    # fold inference-mode BatchNorm into conv weights / biases
    w1, b1 = _fold_pointwise(params["w1"], params["bn1"])      # (inp,hid), (1,hid)
    wdw, bdw = _fold_depthwise(params["wdw"], params["bn2"])   # (3,3,hid), (1,1,hid)
    w3, b3 = _fold_pointwise(params["w3"], params["bn3"])      # (hid,oup), (1,oup)

    args = [x_flat, w1, b1, wdw, bdw, w3, b3]
    in_specs = [
        pl.BlockSpec((1, H * W, inp), lambda n: (n, 0, 0)),
        pl.BlockSpec((inp, hidden), lambda n: (0, 0)),
        pl.BlockSpec((1, hidden), lambda n: (0, 0)),
        pl.BlockSpec((3, 3, hidden), lambda n: (0, 0, 0)),
        pl.BlockSpec((1, 1, hidden), lambda n: (0, 0, 0)),
        pl.BlockSpec((hidden, oup), lambda n: (0, 0)),
        pl.BlockSpec((1, oup), lambda n: (0, 0)),
    ]
    if mode != "identity":
        wp, bp = _fold_pointwise(params["wp"], params["bnp"])
        cp = wp.shape[1]
        args += [wp, bp]
        in_specs += [pl.BlockSpec((inp, cp), lambda n: (0, 0)),
                     pl.BlockSpec((1, cp), lambda n: (0, 0))]

    out_flat = pl.pallas_call(
        functools.partial(_fused_block_kernel, stride=stride, mode=mode),
        out_shape=jax.ShapeDtypeStruct((N, Ho * Wo, oup), jnp.float32),
        grid_spec=pltpu.PrefetchScalarGridSpec(
            num_scalar_prefetch=0,
            grid=(N,),
            in_specs=in_specs,
            out_specs=pl.BlockSpec((1, Ho * Wo, oup), lambda n: (n, 0, 0)),
            scratch_shapes=[pltpu.VMEM((H + 2, W + 2, hidden), jnp.float32)],
        ),
        compiler_params=pltpu.CompilerParams(
            dimension_semantics=("parallel",)),
    )(*args)

    out = out_flat.reshape(N, Ho, Wo, oup)
    return jnp.transpose(out, (0, 3, 1, 2))                    # back to NCHW


# ----------------------------- reference (pure JAX) -----------------------------

def _conv2d_nchw(x, w, stride=1, padding=0, groups=1):
    return jax.lax.conv_general_dilated(
        x, w, window_strides=(stride, stride),
        padding=[(padding, padding), (padding, padding)],
        dimension_numbers=("NCHW", "OIHW", "NCHW"),
        feature_group_count=groups)


def _bn_eval(x, gamma, beta, mean, var):
    s = gamma / jnp.sqrt(var + BN_EPS)
    return x * s[None, :, None, None] + (beta - mean * s)[None, :, None, None]


def _relu6(x):
    return jnp.clip(x, 0.0, RELU6_MAX)


def modified_residual_reference(params, x, *, inp, oup, stride, expand_ratio):
    hidden = oup * expand_ratio
    use_res = (stride == 1 and inp == oup)
    use_proj_res = (stride == 1 and inp != oup)

    h = _bn_eval(_conv2d_nchw(x, params["w1"]), *params["bn1"])
    h = _bn_eval(_conv2d_nchw(h, params["wdw"], stride=stride, padding=1,
                              groups=hidden), *params["bn2"])
    h = _relu6(h)
    h = _bn_eval(_conv2d_nchw(h, params["w3"]), *params["bn3"])
    h = _relu6(h)

    if use_res:
        return x + h
    proj = _bn_eval(_conv2d_nchw(x, params["wp"]), *params["bnp"])
    if use_proj_res:
        return proj + h
    pooled = jax.lax.reduce_window(proj, -jnp.inf, jax.lax.max,
                                   (1, 1, 2, 2), (1, 1, 2, 2), "VALID")
    return pooled + h


# ----------------------------- main -----------------------------

if __name__ == "__main__":
    key = jax.random.PRNGKey(0)
    N, H, W = 2, 16, 16
    cases = [
        dict(inp=8, oup=8, stride=1, expand_ratio=2),    # identity residual
        dict(inp=8, oup=16, stride=1, expand_ratio=2),   # projected residual
        dict(inp=8, oup=16, stride=2, expand_ratio=1),   # maxpool(projection) residual
    ]
    for i, cfg in enumerate(cases):
        kp, kx = jax.random.split(jax.random.fold_in(key, i))
        params = init_params(kp, **cfg)
        x = jax.random.normal(kx, (N, cfg["inp"], H, W), jnp.float32)

        out = modified_residual_pallas(params, x, **cfg)
        out = jax.block_until_ready(out)

        ref = modified_residual_reference(params, x, **cfg)
        np.testing.assert_allclose(np.asarray(out), np.asarray(ref),
                                   rtol=1e-4, atol=1e-4)
    print("KERNEL_OK")
</pallas_src>

<mosaic_0001>
module attributes {stable_mosaic.version = 11 : i64} {
  func.func @_fused_block_kernel(%arg0: i32, %arg1: memref<1x256x8xf32, #tpu.memory_space<vmem>>, %arg2: memref<8x16xf32, #tpu.memory_space<vmem>>, %arg3: memref<1x16xf32, #tpu.memory_space<vmem>>, %arg4: memref<3x3x16xf32, #tpu.memory_space<vmem>>, %arg5: memref<1x1x16xf32, #tpu.memory_space<vmem>>, %arg6: memref<16x8xf32, #tpu.memory_space<vmem>>, %arg7: memref<1x8xf32, #tpu.memory_space<vmem>>, %arg8: memref<1x256x8xf32, #tpu.memory_space<vmem>>, %arg9: memref<18x18x16xf32, #tpu.memory_space<vmem>>) attributes {dimension_semantics = [#tpu.dimension_semantics<parallel>], iteration_bounds = array<i64: 2>, scalar_prefetch = 0 : i64, scratch_operands = 1 : i64, tpu.core_type = #tpu.core_type<tc>, window_params = [{transform_indices = @transform_0, window_bounds = array<i64: 1, 256, 8>}, {pipeline_mode = #tpu.pipeline_mode<synchronous>, transform_indices = @transform_1, window_bounds = array<i64: 8, 16>}, {pipeline_mode = #tpu.pipeline_mode<synchronous>, transform_indices = @transform_2, window_bounds = array<i64: 1, 16>}, {pipeline_mode = #tpu.pipeline_mode<synchronous>, transform_indices = @transform_3, window_bounds = array<i64: 3, 3, 16>}, {pipeline_mode = #tpu.pipeline_mode<synchronous>, transform_indices = @transform_4, window_bounds = array<i64: 1, 1, 16>}, {pipeline_mode = #tpu.pipeline_mode<synchronous>, transform_indices = @transform_5, window_bounds = array<i64: 16, 8>}, {pipeline_mode = #tpu.pipeline_mode<synchronous>, transform_indices = @transform_6, window_bounds = array<i64: 1, 8>}, {transform_indices = @transform_7, window_bounds = array<i64: 1, 256, 8>}]} {
    %c0 = arith.constant 0 : index
    %c0_0 = arith.constant 0 : index
    %c0_1 = arith.constant 0 : index
    %0 = vector.load %arg1[%c0, %c0_0, %c0_1] : memref<1x256x8xf32, #tpu.memory_space<vmem>>, vector<1x256x8xf32>
    %1 = vector.shape_cast %0 : vector<1x256x8xf32> to vector<256x8xf32>
    %c0_2 = arith.constant 0 : index
    %c0_3 = arith.constant 0 : index
    %2 = vector.load %arg2[%c0_2, %c0_3] : memref<8x16xf32, #tpu.memory_space<vmem>>, vector<8x16xf32>
    %cst = arith.constant dense<0.000000e+00> : vector<256x16xf32>
    %3 = tpu.matmul %1, %2, %cst {dimension_numbers = #tpu.dot_dimension_numbers<[1], [0], [0], [1], [0, 0, 1, 1], [], []>} : vector<256x8xf32>, vector<8x16xf32>, vector<256x16xf32> -> vector<256x16xf32>
    %c0_4 = arith.constant 0 : index
    %c0_5 = arith.constant 0 : index
    %4 = vector.load %arg3[%c0_4, %c0_5] : memref<1x16xf32, #tpu.memory_space<vmem>>, vector<1x16xf32>
    %5 = vector.broadcast %4 : vector<1x16xf32> to vector<256x16xf32>
    %6 = arith.addf %3, %5 : vector<256x16xf32>
    %cst_6 = arith.constant 0.000000e+00 : f32
    %7 = vector.broadcast %cst_6 : f32 to vector<18x18x16xf32>
    %c0_7 = arith.constant 0 : index
    %c0_8 = arith.constant 0 : index
    %c0_9 = arith.constant 0 : index
    %8 = vector.load %arg9[%c0_7, %c0_8, %c0_9] : memref<18x18x16xf32, #tpu.memory_space<vmem>>, vector<18x18x16xf32>
    tpu.vector_store %arg9[%c0_7, %c0_8, %c0_9], %7 {strides = array<i32>} : memref<18x18x16xf32, #tpu.memory_space<vmem>>, vector<18x18x16xf32>,
    %9 = vector.shape_cast %6 : vector<256x16xf32> to vector<16x16x16xf32>
    %c1 = arith.constant 1 : index
    %c1_10 = arith.constant 1 : index
    %c0_11 = arith.constant 0 : index
    %10 = vector.load %arg9[%c1, %c1_10, %c0_11] : memref<18x18x16xf32, #tpu.memory_space<vmem>>, vector<16x16x16xf32>
    tpu.vector_store %arg9[%c1, %c1_10, %c0_11], %9 {strides = array<i32>} : memref<18x18x16xf32, #tpu.memory_space<vmem>>, vector<16x16x16xf32>,
    %c0_12 = arith.constant 0 : index
    %c0_13 = arith.constant 0 : index
    %c0_14 = arith.constant 0 : index
    %11 = vector.load %arg4[%c0_12, %c0_13, %c0_14] : memref<3x3x16xf32, #tpu.memory_space<vmem>>, vector<3x3x16xf32>
    %cst_15 = arith.constant 0.000000e+00 : f32
    %12 = vector.broadcast %cst_15 : f32 to vector<16x16x16xf32>
    %c0_16 = arith.constant 0 : index
    %c0_17 = arith.constant 0 : index
    %c0_18 = arith.constant 0 : index
    %13 = vector.load %arg9[%c0_16, %c0_17, %c0_18] : memref<18x18x16xf32, #tpu.memory_space<vmem>>, vector<16x16x16xf32>
    %14 = vector.extract_strided_slice %11 {offsets = [0, 0, 0], sizes = [1, 1, 16], strides = [1, 1, 1]} : vector<3x3x16xf32> to vector<1x1x16xf32>
    %15 = vector.broadcast %14 : vector<1x1x16xf32> to vector<16x16x16xf32>
    %16 = arith.mulf %13, %15 : vector<16x16x16xf32>
    %17 = arith.addf %12, %16 : vector<16x16x16xf32>
    %c0_19 = arith.constant 0 : index
    %c1_20 = arith.constant 1 : index
    %c0_21 = arith.constant 0 : index
    %18 = vector.load %arg9[%c0_19, %c1_20, %c0_21] : memref<18x18x16xf32, #tpu.memory_space<vmem>>, vector<16x16x16xf32>
    %19 = vector.extract_strided_slice %11 {offsets = [0, 1, 0], sizes = [1, 1, 16], strides = [1, 1, 1]} : vector<3x3x16xf32> to vector<1x1x16xf32>
    %20 = vector.broadcast %19 : vector<1x1x16xf32> to vector<16x16x16xf32>
    %21 = arith.mulf %18, %20 : vector<16x16x16xf32>
    %22 = arith.addf %17, %21 : vector<16x16x16xf32>
    %c0_22 = arith.constant 0 : index
    %c2 = arith.constant 2 : index
    %c0_23 = arith.constant 0 : index
    %23 = vector.load %arg9[%c0_22, %c2, %c0_23] : memref<18x18x16xf32, #tpu.memory_space<vmem>>, vector<16x16x16xf32>
    %24 = vector.extract_strided_slice %11 {offsets = [0, 2, 0], sizes = [1, 1, 16], strides = [1, 1, 1]} : vector<3x3x16xf32> to vector<1x1x16xf32>
    %25 = vector.broadcast %24 : vector<1x1x16xf32> to vector<16x16x16xf32>
    %26 = arith.mulf %23, %25 : vector<16x16x16xf32>
    %27 = arith.addf %22, %26 : vector<16x16x16xf32>
    %c1_24 = arith.constant 1 : index
    %c0_25 = arith.constant 0 : index
    %c0_26 = arith.constant 0 : index
    %28 = vector.load %arg9[%c1_24, %c0_25, %c0_26] : memref<18x18x16xf32, #tpu.memory_space<vmem>>, vector<16x16x16xf32>
    %29 = vector.extract_strided_slice %11 {offsets = [1, 0, 0], sizes = [1, 1, 16], strides = [1, 1, 1]} : vector<3x3x16xf32> to vector<1x1x16xf32>
    %30 = vector.broadcast %29 : vector<1x1x16xf32> to vector<16x16x16xf32>
    %31 = arith.mulf %28, %30 : vector<16x16x16xf32>
    %32 = arith.addf %27, %31 : vector<16x16x16xf32>
    %c1_27 = arith.constant 1 : index
    %c1_28 = arith.constant 1 : index
    %c0_29 = arith.constant 0 : index
    %33 = vector.load %arg9[%c1_27, %c1_28, %c0_29] : memref<18x18x16xf32, #tpu.memory_space<vmem>>, vector<16x16x16xf32>
    %34 = vector.extract_strided_slice %11 {offsets = [1, 1, 0], sizes = [1, 1, 16], strides = [1, 1, 1]} : vector<3x3x16xf32> to vector<1x1x16xf32>
    %35 = vector.broadcast %34 : vector<1x1x16xf32> to vector<16x16x16xf32>
    %36 = arith.mulf %33, %35 : vector<16x16x16xf32>
    %37 = arith.addf %32, %36 : vector<16x16x16xf32>
    %c1_30 = arith.constant 1 : index
    %c2_31 = arith.constant 2 : index
    %c0_32 = arith.constant 0 : index
    %38 = vector.load %arg9[%c1_30, %c2_31, %c0_32] : memref<18x18x16xf32, #tpu.memory_space<vmem>>, vector<16x16x16xf32>
    %39 = vector.extract_strided_slice %11 {offsets = [1, 2, 0], sizes = [1, 1, 16], strides = [1, 1, 1]} : vector<3x3x16xf32> to vector<1x1x16xf32>
    %40 = vector.broadcast %39 : vector<1x1x16xf32> to vector<16x16x16xf32>
    %41 = arith.mulf %38, %40 : vector<16x16x16xf32>
    %42 = arith.addf %37, %41 : vector<16x16x16xf32>
    %c2_33 = arith.constant 2 : index
    %c0_34 = arith.constant 0 : index
    %c0_35 = arith.constant 0 : index
    %43 = vector.load %arg9[%c2_33, %c0_34, %c0_35] : memref<18x18x16xf32, #tpu.memory_space<vmem>>, vector<16x16x16xf32>
    %44 = vector.extract_strided_slice %11 {offsets = [2, 0, 0], sizes = [1, 1, 16], strides = [1, 1, 1]} : vector<3x3x16xf32> to vector<1x1x16xf32>
    %45 = vector.broadcast %44 : vector<1x1x16xf32> to vector<16x16x16xf32>
    %46 = arith.mulf %43, %45 : vector<16x16x16xf32>
    %47 = arith.addf %42, %46 : vector<16x16x16xf32>
    %c2_36 = arith.constant 2 : index
    %c1_37 = arith.constant 1 : index
    %c0_38 = arith.constant 0 : index
    %48 = vector.load %arg9[%c2_36, %c1_37, %c0_38] : memref<18x18x16xf32, #tpu.memory_space<vmem>>, vector<16x16x16xf32>
    %49 = vector.extract_strided_slice %11 {offsets = [2, 1, 0], sizes = [1, 1, 16], strides = [1, 1, 1]} : vector<3x3x16xf32> to vector<1x1x16xf32>
    %50 = vector.broadcast %49 : vector<1x1x16xf32> to vector<16x16x16xf32>
    %51 = arith.mulf %48, %50 : vector<16x16x16xf32>
    %52 = arith.addf %47, %51 : vector<16x16x16xf32>
    %c2_39 = arith.constant 2 : index
    %c2_40 = arith.constant 2 : index
    %c0_41 = arith.constant 0 : index
    %53 = vector.load %arg9[%c2_39, %c2_40, %c0_41] : memref<18x18x16xf32, #tpu.memory_space<vmem>>, vector<16x16x16xf32>
    %54 = vector.extract_strided_slice %11 {offsets = [2, 2, 0], sizes = [1, 1, 16], strides = [1, 1, 1]} : vector<3x3x16xf32> to vector<1x1x16xf32>
    %55 = vector.broadcast %54 : vector<1x1x16xf32> to vector<16x16x16xf32>
    %56 = arith.mulf %53, %55 : vector<16x16x16xf32>
    %57 = arith.addf %52, %56 : vector<16x16x16xf32>
    %c0_42 = arith.constant 0 : index
    %c0_43 = arith.constant 0 : index
    %c0_44 = arith.constant 0 : index
    %58 = vector.load %arg5[%c0_42, %c0_43, %c0_44] : memref<1x1x16xf32, #tpu.memory_space<vmem>>, vector<1x1x16xf32>
    %59 = vector.broadcast %58 : vector<1x1x16xf32> to vector<16x16x16xf32>
    %60 = arith.addf %57, %59 : vector<16x16x16xf32>
    %cst_45 = arith.constant 0.000000e+00 : f32
    %cst_46 = arith.constant 6.000000e+00 : f32
    %61 = vector.broadcast %cst_45 : f32 to vector<16x16x16xf32>
    %62 = arith.maximumf %61, %60 : vector<16x16x16xf32>
    %63 = vector.broadcast %cst_46 : f32 to vector<16x16x16xf32>
    %64 = arith.minimumf %63, %62 : vector<16x16x16xf32>
    %65 = vector.shape_cast %64 : vector<16x16x16xf32> to vector<256x16xf32>
    %c0_47 = arith.constant 0 : index
    %c0_48 = arith.constant 0 : index
    %66 = vector.load %arg6[%c0_47, %c0_48] : memref<16x8xf32, #tpu.memory_space<vmem>>, vector<16x8xf32>
    %cst_49 = arith.constant dense<0.000000e+00> : vector<256x8xf32>
    %67 = tpu.matmul %65, %66, %cst_49 {dimension_numbers = #tpu.dot_dimension_numbers<[1], [0], [0], [1], [0, 0, 1, 1], [], []>} : vector<256x16xf32>, vector<16x8xf32>, vector<256x8xf32> -> vector<256x8xf32>
    %c0_50 = arith.constant 0 : index
    %c0_51 = arith.constant 0 : index
    %68 = vector.load %arg7[%c0_50, %c0_51] : memref<1x8xf32, #tpu.memory_space<vmem>>, vector<1x8xf32>
    %69 = vector.broadcast %68 : vector<1x8xf32> to vector<256x8xf32>
    %70 = arith.addf %67, %69 : vector<256x8xf32>
    %cst_52 = arith.constant 0.000000e+00 : f32
    %cst_53 = arith.constant 6.000000e+00 : f32
    %71 = vector.broadcast %cst_52 : f32 to vector<256x8xf32>
    %72 = arith.maximumf %71, %70 : vector<256x8xf32>
    %73 = vector.broadcast %cst_53 : f32 to vector<256x8xf32>
    %74 = arith.minimumf %73, %72 : vector<256x8xf32>
    %75 = arith.addf %74, %1 : vector<256x8xf32>
    %c0_54 = arith.constant 0 : index
    %c0_55 = arith.constant 0 : index
    %c0_56 = arith.constant 0 : index
    %76 = vector.load %arg8[%c0_54, %c0_55, %c0_56] : memref<1x256x8xf32, #tpu.memory_space<vmem>>, vector<1x256x8xf32>
    %77 = vector.shape_cast %76 : vector<1x256x8xf32> to vector<256x8xf32>
    %78 = vector.shape_cast %75 : vector<256x8xf32> to vector<1x256x8xf32>
    tpu.vector_store %arg8[%c0_54, %c0_55, %c0_56], %78 {strides = array<i32>} : memref<1x256x8xf32, #tpu.memory_space<vmem>>, vector<1x256x8xf32>,
    return
  }
  func.func @transform_0(%arg0: i32) -> (i32, i32, i32) {
    %c0_i32 = arith.constant 0 : i32
    %c0_i32_0 = arith.constant 0 : i32
    %c0_i32_1 = arith.constant 0 : i32
    return %arg0, %c0_i32, %c0_i32_0 : i32, i32, i32
  }
  func.func @transform_1(%arg0: i32) -> (i32, i32) {
    %c0_i32 = arith.constant 0 : i32
    %c0_i32_0 = arith.constant 0 : i32
    %c0_i32_1 = arith.constant 0 : i32
    return %c0_i32, %c0_i32_0 : i32, i32
  }
  func.func @transform_2(%arg0: i32) -> (i32, i32) {
    %c0_i32 = arith.constant 0 : i32
    %c0_i32_0 = arith.constant 0 : i32
    %c0_i32_1 = arith.constant 0 : i32
    return %c0_i32, %c0_i32_0 : i32, i32
  }
  func.func @transform_3(%arg0: i32) -> (i32, i32, i32) {
    %c0_i32 = arith.constant 0 : i32
    %c0_i32_0 = arith.constant 0 : i32
    %c0_i32_1 = arith.constant 0 : i32
    %c0_i32_2 = arith.constant 0 : i32
    return %c0_i32, %c0_i32_0, %c0_i32_1 : i32, i32, i32
  }
  func.func @transform_4(%arg0: i32) -> (i32, i32, i32) {
    %c0_i32 = arith.constant 0 : i32
    %c0_i32_0 = arith.constant 0 : i32
    %c0_i32_1 = arith.constant 0 : i32
    %c0_i32_2 = arith.constant 0 : i32
    return %c0_i32, %c0_i32_0, %c0_i32_1 : i32, i32, i32
  }
  func.func @transform_5(%arg0: i32) -> (i32, i32) {
    %c0_i32 = arith.constant 0 : i32
    %c0_i32_0 = arith.constant 0 : i32
    %c0_i32_1 = arith.constant 0 : i32
    return %c0_i32, %c0_i32_0 : i32, i32
  }
  func.func @transform_6(%arg0: i32) -> (i32, i32) {
    %c0_i32 = arith.constant 0 : i32
    %c0_i32_0 = arith.constant 0 : i32
    %c0_i32_1 = arith.constant 0 : i32
    return %c0_i32, %c0_i32_0 : i32, i32
  }
  func.func @transform_7(%arg0: i32) -> (i32, i32, i32) {
    %c0_i32 = arith.constant 0 : i32
    %c0_i32_0 = arith.constant 0 : i32
    %c0_i32_1 = arith.constant 0 : i32
    return %arg0, %c0_i32, %c0_i32_0 : i32, i32, i32
  }
}

</mosaic_0001>

<bundles_post_ra>
// kernel: tpu_custom_call.1
= control target key start
LH: loop header
LB: loop body
LE: loop exit
PB: predicated region body
PF: predicated region fallthrough
CT: control target
= control target key end

     0   :  { %s2590_s24 = smov 0   ;;  %s3741_s0 = inlined_call_operand.vmem [shape: f32[2,256,8], index: 0, kind: input, shape index: {}]   ;;  %s3742_s1 = inlined_call_operand.vmem [shape: f32[8,16], index: 1, kind: input, shape index: {}]   ;;  %s3743_s2 = inlined_call_operand.vmem [shape: f32[1,16], index: 2, kind: input, shape index: {}]   ;;  %s3744_s3 = inlined_call_operand.vmem [shape: f32[3,3,16], index: 3, kind: input, shape index: {}]   ;;  %s3745_s4 = inlined_call_operand.vmem [shape: f32[1,1,16], index: 4, kind: input, shape index: {}]   ;;  %s3746_s5 = inlined_call_operand.vmem [shape: f32[16,8], index: 5, kind: input, shape index: {}]   ;;  %s3747_s6 = inlined_call_operand.vmem [shape: f32[1,8], index: 6, kind: input, shape index: {}]   ;;  %s3748_s7 = inlined_call_operand.vmem [shape: f32[2,256,8], index: 7, kind: output, shape index: {}]  }
   0x1 LB: > { %s2250_s25 = sadd.s32 4294967295, %s2547_s24   ;;  %p2254_p0 = scmp.ge.s32.totalorder %s2547_s24, 1  ;;  %s2547_s24 = sphi %s2590_s24, %s17_s24  }
   0x2   : > { %p237_p1 = scmp.lt.s32.totalorder %s2547_s24, 3 }
   0x4   : > { %p238_p2 = pnand %p2254_p0, %p237_p1 }
   0x5   : > { %p269_p3 = scmp.lt.s32.totalorder (!%p238_p2), %s2250_s25, 1 }
   0x6   : > { %241 = sbr.rel (%p238_p2) target bundleno = 601 (0x259), region = 48 }
   0xb   : > { %v311_v0 = vld [vmem:[%s3742_s1] sm:$0xff]  ;;  %s3750_s25 = smov (!%p269_p3, %s2250_s25), 1  ;;  %vm319_vm0 = vcmask 64512   ;;  %vm641_vm1 = vcmask 130048   ;;  %vm644_vm2 = vcmask 123904   ;;  %v2549_v33 = vmov 0.0  }
   0xc   : > { %2397 = vmatprep.subr.mxu0 %v311_v0  ;;  %s2328_s28 = sshll.u32 %s3750_s25, 8  ;;  %647 = vst.msk [vmem:[#allocation2 + $0x20] sm:$0xff] %vm641_vm1, %v2549_v33  ;;  %642 = vst.msk [vmem:[#allocation2] sm:$0xff] %vm641_vm1, %v2549_v33  ;;  %v1738_v34 = vld [vmem:[%s3746_s5 + $0x8] sm:$0xff]  ;;  %v1737_v35 = vld [vmem:[%s3746_s5] sm:$0xff]  ;;  %v765_v36 = vlaneseq }
   0xd   : > { %2398 = vmatpush3.msra.mxu0 %v311_v0  ;;  %s2609_s8 = scalar_lea.vmem %s3741_s0, %s2328_s28  ;;  %648 = vst.msk [vmem:[#allocation2 + $0x28] sm:$0x3] %vm644_vm2, %v2549_v33  ;;  %645 = vst.msk [vmem:[#allocation2 + $0x10] sm:$0x3] %vm644_vm2, %v2549_v33  ;;  %2447 = vmatprep.subr.mxu1 %v1738_v34  ;;  %v730_v40 = vld [vmem:[%s3744_s3] sm:$0x7]  ;;  %s3610_s10 = scalar_lea.vmem %s3748_s7, %s2328_s28 }
   0xe   : > { %v279_v1 = vld [vmem:[%s2609_s8] sm:$0xff]  ;;  %v280_v2 = vld [vmem:[%s2609_s8 + $0x8] sm:$0xff]  ;;  %v281_v3 = vld [vmem:[%s2609_s8 + $0x10] sm:$0xff]  ;;  %643 = vst.msk [vmem:[#allocation2 + $0x8] sm:$0xff] %vm641_vm1, %v2549_v33  ;;  %2448 = vmatpush3.msra.mxu1 %v1738_v34  ;;  %v766_v37 = vshrl.u32 %v765_v36, 7 }
   0xf   : > { %2399 = vmatprep.mubr.msk.f32.mxu0 %vm319_vm0, %v279_v1  ;;  %v282_v4 = vld [vmem:[%s2609_s8 + $0x18] sm:$0xff]  ;;  %v283_v5 = vld [vmem:[%s2609_s8 + $0x20] sm:$0xff]  ;;  %v284_v6 = vld [vmem:[%s2609_s8 + $0x28] sm:$0xff]  ;;  %646 = vst.msk [vmem:[#allocation2 + $0x18] sm:$0xff] %vm641_vm1, %v2549_v33  ;;  %2449 = vmatprep.subr.mxu1 %v1737_v35 }
  0x10   : > { %2400 = vmatmul.mubr.msk.f32.vlgmr.msra.gmra.mxu0 %vm319_vm0, %v280_v2  ;;  %v285_v7 = vld [vmem:[%s2609_s8 + $0x30] sm:$0xff]  ;;  %v286_v8 = vld [vmem:[%s2609_s8 + $0x38] sm:$0xff]  ;;  %v287_v9 = vld [vmem:[%s2609_s8 + $0x40] sm:$0xff]  ;;  %649 = vst.msk [vmem:[#allocation2 + $0x30] sm:$0xff] %vm641_vm1, %v2549_v33  ;;  %2450 = vmatpush3.msra.mxu1 %v1737_v35  ;;  %v767_v38 = vsub.s32 0, %v766_v37  ;;  %v867_v39 = vsub.s32 1, %v766_v37 }
  0x11   : > { %2402 = vmatprep.mubr.msk.f32.mxu0 %vm319_vm0, %v281_v3  ;;  %v288_v10 = vld [vmem:[%s2609_s8 + $0x48] sm:$0xff]  ;;  %v289_v11 = vld [vmem:[%s2609_s8 + $0x50] sm:$0xff]  ;;  %v290_v12 = vld [vmem:[%s2609_s8 + $0x58] sm:$0xff]  ;;  %650 = vst.msk [vmem:[#allocation2 + $0x38] sm:$0xff] %vm641_vm1, %v2549_v33  ;;  %v967_v44 = vsub.s32 2, %v766_v37 }
  0x12   : > { %v291_v13 = vld [vmem:[%s2609_s8 + $0x60] sm:$0xff]  ;;  %v292_v14 = vld [vmem:[%s2609_s8 + $0x68] sm:$0xff]  ;;  %v293_v15 = vld [vmem:[%s2609_s8 + $0x70] sm:$0xff]  ;;  %651 = vst.msk [vmem:[#allocation2 + $0x40] sm:$0x3] %vm644_vm2, %v2549_v33  ;;  %v2743_v42 = vrot.slane %v730_v40, %v767_v38  ;;  %v2745_v43 = vrot.slane %v730_v40, %v867_v39 }
  0x13   : > { %v294_v16 = vld [vmem:[%s2609_s8 + $0x78] sm:$0xff]  ;;  %v295_v17 = vld [vmem:[%s2609_s8 + $0x80] sm:$0xff]  ;;  %v296_v18 = vld [vmem:[%s2609_s8 + $0x88] sm:$0xff]  ;;  %652 = vst.msk [vmem:[#allocation2 + $0x48] sm:$0xff] %vm641_vm1, %v2549_v33  ;;  %v2752_v55 = vrot.slane %v730_v40, %v967_v44 }
  0x14   : > { %2403 = vmatmul.mubr.msk.f32.gmra.mxu0 %vm319_vm0, %v282_v4  ;;  %v297_v19 = vld [vmem:[%s2609_s8 + $0x90] sm:$0xff]  ;;  %v298_v20 = vld [vmem:[%s2609_s8 + $0x98] sm:$0xff]  ;;  %v299_v21 = vld [vmem:[%s2609_s8 + $0xa0] sm:$0xff]  ;;  %653 = vst.msk [vmem:[#allocation2 + $0x50] sm:$0xff] %vm641_vm1, %v2549_v33 }
  0x15   : > { %2405 = vmatprep.mubr.msk.f32.mxu0 %vm319_vm0, %v283_v5  ;;  %v300_v22 = vld [vmem:[%s2609_s8 + $0xa8] sm:$0xff]  ;;  %v301_v23 = vld [vmem:[%s2609_s8 + $0xb0] sm:$0xff]  ;;  %v302_v24 = vld [vmem:[%s2609_s8 + $0xb8] sm:$0xff]  ;;  %654 = vst.msk [vmem:[#allocation2 + $0x58] sm:$0x3] %vm644_vm2, %v2549_v33 }
  0x16   : > { %v303_v25 = vld [vmem:[%s2609_s8 + $0xc0] sm:$0xff]  ;;  %v304_v26 = vld [vmem:[%s2609_s8 + $0xc8] sm:$0xff]  ;;  %v305_v27 = vld [vmem:[%s2609_s8 + $0xd0] sm:$0xff]  ;;  %655 = vst.msk [vmem:[#allocation2 + $0x60] sm:$0xff] %vm641_vm1, %v2549_v33 }
  0x17   : > { %v306_v28 = vld [vmem:[%s2609_s8 + $0xd8] sm:$0xff]  ;;  %v307_v29 = vld [vmem:[%s2609_s8 + $0xe0] sm:$0xff]  ;;  %v308_v30 = vld [vmem:[%s2609_s8 + $0xe8] sm:$0xff]  ;;  %656 = vst.msk [vmem:[#allocation2 + $0x68] sm:$0xff] %vm641_vm1, %v2549_v33 }
  0x18   : > { %2406 = vmatmul.mubr.msk.f32.gmra.mxu0 %vm319_vm0, %v284_v6  ;;  %v309_v31 = vld [vmem:[%s2609_s8 + $0xf0] sm:$0xff]  ;;  %v310_v32 = vld [vmem:[%s2609_s8 + $0xf8] sm:$0xff]  ;;  %657 = vst.msk [vmem:[#allocation2 + $0x70] sm:$0x3] %vm644_vm2, %v2549_v33  ;;  %660 = vst.msk [vmem:[#allocation2 + $0x88] sm:$0x3] %vm644_vm2, %v2549_v33 }
  0x19   : > { %2408 = vmatprep.mubr.msk.f32.mxu0 %vm319_vm0, %v285_v7  ;;  %658 = vst.msk [vmem:[#allocation2 + $0x78] sm:$0xff] %vm641_vm1, %v2549_v33  ;;  %659 = vst.msk [vmem:[#allocation2 + $0x80] sm:$0xff] %vm641_vm1, %v2549_v33  ;;  %v2741_v41 = vld [vmem:[%s3743_s2] ss:$0 sm:$0xff]  ;;  %v833_v47 = vld [vmem:[#allocation2 + $0x1] sm:$0xff] }
  0x1a   : > { %661 = vst.msk [vmem:[#allocation2 + $0x90] sm:$0xff] %vm641_vm1, %v2549_v33  ;;  %662 = vst.msk [vmem:[#allocation2 + $0x98] sm:$0xff] %vm641_vm1, %v2549_v33  ;;  %v733_v46 = vld [vmem:[#allocation2] sm:$0xff]  ;;  %v734_v49 = vld [vmem:[#allocation2 + $0x8] sm:$0xff]  ;;  %v869_v54 = vmul.f32 %v2745_v43, %v833_v47 }
  0x1b   : > { %663 = vst.msk [vmem:[#allocation2 + $0xa0] sm:$0x3] %vm644_vm2, %v2549_v33  ;;  %666 = vst.msk [vmem:[#allocation2 + $0xb8] sm:$0x3] %vm644_vm2, %v2549_v33  ;;  %v834_v50 = vld [vmem:[#allocation2 + $0x9] sm:$0xff]  ;;  %v769_v53 = vmul.f32 %v2743_v42, %v733_v46  ;;  %v770_v58 = vmul.f32 %v2743_v42, %v734_v49 }
  0x1c   : > { %2409 = vmatmul.mubr.msk.f32.gmra.mxu0 %vm319_vm0, %v286_v8  ;;  %664 = vst.msk [vmem:[#allocation2 + $0xa8] sm:$0xff] %vm641_vm1, %v2549_v33  ;;  %665 = vst.msk [vmem:[#allocation2 + $0xb0] sm:$0xff] %vm641_vm1, %v2549_v33  ;;  %v933_v57 = vld [vmem:[#allocation2 + $0x2] sm:$0xff]  ;;  %v870_v59 = vmul.f32 %v2745_v43, %v834_v50  ;;  %v934_v62 = vld [vmem:[#allocation2 + $0xa] sm:$0xff] }
  0x1d   : > { %2411 = vmatprep.mubr.msk.f32.mxu0 %vm319_vm0, %v287_v9  ;;  %667 = vst.msk [vmem:[#allocation2 + $0xc0] sm:$0xff] %vm641_vm1, %v2549_v33  ;;  %668 = vst.msk [vmem:[#allocation2 + $0xc8] sm:$0xff] %vm641_vm1, %v2549_v33  ;;  %v731_v61 = vld [vmem:[%s3744_s3 + $0x4] sm:$0x7]  ;;  %v901_v1 = vadd.f32 %v869_v54, %v769_v53  ;;  %v969_v2 = vmul.f32 %v2752_v55, %v933_v57  ;;  %v732_v4 = vld [vmem:[%s3744_s3 + $0x8] sm:$0x7]  ;;  %v970_v7 = vmul.f32 %v2752_v55, %v934_v62 }
  0x1e   : > { %669 = vst.msk [vmem:[#allocation2 + $0xd0] sm:$0x3] %vm644_vm2, %v2549_v33  ;;  %672 = vst.msk [vmem:[#allocation2 + $0xe8] sm:$0x3] %vm644_vm2, %v2549_v33  ;;  %v2767_v5 = vrot.slane %v731_v61, %v867_v39  ;;  %v902_v6 = vadd.f32 %v870_v59, %v770_v58  ;;  %v2772_v9 = vrot.slane %v731_v61, %v767_v38 }
  0x1f   : > { %670 = vst.msk [vmem:[#allocation2 + $0xd8] sm:$0xff] %vm641_vm1, %v2549_v33  ;;  %671 = vst.msk [vmem:[#allocation2 + $0xe0] sm:$0xff] %vm641_vm1, %v2549_v33 }
  0x20   : > { %2412 = vmatmul.mubr.msk.f32.gmra.mxu0 %vm319_vm0, %v288_v10  ;;  %673 = vst.msk [vmem:[#allocation2 + $0xf0] sm:$0xff] %vm641_vm1, %v2549_v33  ;;  %674 = vst.msk [vmem:[#allocation2 + $0xf8] sm:$0xff] %vm641_vm1, %v2549_v33  ;;  %v2774_v10 = vrot.slane %v731_v61, %v967_v44 }
  0x21   : > { %2414 = vmatprep.mubr.msk.f32.mxu0 %vm319_vm0, %v289_v11  ;;  %675 = vst.msk [vmem:[#allocation2 + $0x100] sm:$0x3] %vm644_vm2, %v2549_v33  ;;  %678 = vst.msk [vmem:[#allocation2 + $0x118] sm:$0x3] %vm644_vm2, %v2549_v33 }
  0x22   : > { %676 = vst.msk [vmem:[#allocation2 + $0x108] sm:$0xff] %vm641_vm1, %v2549_v33  ;;  %677 = vst.msk [vmem:[#allocation2 + $0x110] sm:$0xff] %vm641_vm1, %v2549_v33 }
  0x23   : > { %679 = vst.msk [vmem:[#allocation2 + $0x120] sm:$0xff] %vm641_vm1, %v2549_v33  ;;  %680 = vst.msk [vmem:[#allocation2 + $0x128] sm:$0xff] %vm641_vm1, %v2549_v33 }
  0x24   : > { %2415 = vmatmul.mubr.msk.f32.gmra.mxu0 %vm319_vm0, %v290_v12  ;;  %681 = vst.msk [vmem:[#allocation2 + $0x130] sm:$0x3] %vm644_vm2, %v2549_v33  ;;  %684 = vst.msk [vmem:[#allocation2 + $0x148] sm:$0x3] %vm644_vm2, %v2549_v33 }
  0x25   : > { %2417 = vmatprep.mubr.msk.f32.mxu0 %vm319_vm0, %v291_v13  ;;  %682 = vst.msk [vmem:[#allocation2 + $0x138] sm:$0xff] %vm641_vm1, %v2549_v33  ;;  %683 = vst.msk [vmem:[#allocation2 + $0x140] sm:$0xff] %vm641_vm1, %v2549_v33 }
  0x26   : > { %685 = vst.msk [vmem:[#allocation2 + $0x150] sm:$0xff] %vm641_vm1, %v2549_v33  ;;  %686 = vst.msk [vmem:[#allocation2 + $0x158] sm:$0xff] %vm641_vm1, %v2549_v33 }
  0x27   : > { %687 = vst.msk [vmem:[#allocation2 + $0x160] sm:$0x3] %vm644_vm2, %v2549_v33  ;;  %690 = vst.msk [vmem:[#allocation2 + $0x178] sm:$0x3] %vm644_vm2, %v2549_v33 }
  0x28   : > { %2418 = vmatmul.mubr.msk.f32.gmra.mxu0 %vm319_vm0, %v292_v14  ;;  %688 = vst.msk [vmem:[#allocation2 + $0x168] sm:$0xff] %vm641_vm1, %v2549_v33  ;;  %689 = vst.msk [vmem:[#allocation2 + $0x170] sm:$0xff] %vm641_vm1, %v2549_v33 }
  0x29   : > { %2420 = vmatprep.mubr.msk.f32.mxu0 %vm319_vm0, %v293_v15  ;;  %691 = vst.msk [vmem:[#allocation2 + $0x180] sm:$0xff] %vm641_vm1, %v2549_v33  ;;  %692 = vst.msk [vmem:[#allocation2 + $0x188] sm:$0xff] %vm641_vm1, %v2549_v33  ;;  %v1001_v15 = vadd.f32 %v969_v2, %v901_v1 }
  0x2a   : > { %693 = vst.msk [vmem:[#allocation2 + $0x190] sm:$0x3] %vm644_vm2, %v2549_v33  ;;  %696 = vst.msk [vmem:[#allocation2 + $0x1a8] sm:$0x3] %vm644_vm2, %v2549_v33 }
  0x2b   : > { %694 = vst.msk [vmem:[#allocation2 + $0x198] sm:$0xff] %vm641_vm1, %v2549_v33  ;;  %695 = vst.msk [vmem:[#allocation2 + $0x1a0] sm:$0xff] %vm641_vm1, %v2549_v33 }
  0x2c   : > { %2421 = vmatmul.mubr.msk.f32.gmra.mxu0 %vm319_vm0, %v294_v16  ;;  %v2778_v16 = vrot.slane %v732_v4, %v867_v39 }
  0x2d   : > { %2423 = vmatprep.mubr.msk.f32.mxu0 %vm319_vm0, %v295_v17 }
  0x30   : > { %2424 = vmatmul.mubr.msk.f32.gmra.mxu0 %vm319_vm0, %v296_v18 }
  0x31   : > { %2426 = vmatprep.mubr.msk.f32.mxu0 %vm319_vm0, %v297_v19 }
  0x34   : > { %2427 = vmatmul.mubr.msk.f32.gmra.mxu0 %vm319_vm0, %v298_v20 }
  0x35   : > { %2429 = vmatprep.mubr.msk.f32.mxu0 %vm319_vm0, %v299_v21  ;;  %v2780_v21 = vrot.slane %v732_v4, %v767_v38 }
  0x38   : > { %2430 = vmatmul.mubr.msk.f32.gmra.mxu0 %vm319_vm0, %v300_v22  ;;  %v2782_v22 = vrot.slane %v732_v4, %v967_v44 }
  0x39   : > { %2432 = vmatprep.mubr.msk.f32.mxu0 %vm319_vm0, %v301_v23  ;;  %v1002_v23 = vadd.f32 %v970_v7, %v902_v6 }
  0x3c   : > { %2433 = vmatmul.mubr.msk.f32.gmra.mxu0 %vm319_vm0, %v302_v24 }
  0x3d   : > { %2435 = vmatprep.mubr.msk.f32.mxu0 %vm319_vm0, %v303_v25 }
  0x40   : > { %2436 = vmatmul.mubr.msk.f32.gmra.mxu0 %vm319_vm0, %v304_v26 }
  0x41   : > { %2438 = vmatprep.mubr.msk.f32.mxu0 %vm319_vm0, %v305_v27 }
  0x44   : > { %2439 = vmatmul.mubr.msk.f32.gmra.mxu0 %vm319_vm0, %v306_v28 }
  0x45   : > { %2441 = vmatprep.mubr.msk.f32.mxu0 %vm319_vm0, %v307_v29 }
  0x48   : > { %2442 = vmatmul.mubr.msk.f32.gmra.mxu0 %vm319_vm0, %v308_v30 }
  0x49   : > { %2444 = vmatprep.mubr.msk.f32.mxu0 %vm319_vm0, %v309_v31 }
  0x4c   : > { %2445 = vmatmul.mubr.msk.f32.gmra.mxu0 %vm319_vm0, %v310_v32 }
  0xd0   : > { %v2401_v45 = vpop.f32.mrf.mxu0 }
  0xd1   : > { %v488_v48 = vadd.f32 %v2401_v45, %v2741_v41 }
  0xd2   : > { %v482_v51 = vpop.f32.mrf.mxu0 }
  0xd3   : > { %699 = vst.msk [vmem:[#allocation2 + $0x21] sm:$0xff] %vm641_vm1, %v488_v48  ;;  %v483_v52 = vadd.f32 %v2741_v41, %v482_v51 }
  0xd4   : > { %v2404_v56 = vpop.f32.mrf.mxu0 }
  0xd5   : > { %698 = vst.msk [vmem:[#allocation2 + $0x19] sm:$0xff] %vm641_vm1, %v483_v52  ;;  %v498_v60 = vadd.f32 %v2404_v56, %v2741_v41 }
  0xd6   : > { %v492_v63 = vpop.f32.mrf.mxu0 }
  0xd7   : > { %701 = vst.msk [vmem:[#allocation2 + $0x39] sm:$0xff] %vm641_vm1, %v498_v60  ;;  %v493_v0 = vadd.f32 %v2741_v41, %v492_v63 }
  0xd8   : > { %v2407_v3 = vpop.f32.mrf.mxu0 }
  0xd9   : > { %700 = vst.msk [vmem:[#allocation2 + $0x31] sm:$0xff] %vm641_vm1, %v493_v0  ;;  %v508_v8 = vadd.f32 %v2407_v3, %v2741_v41 }
  0xda   : > { %v502_v11 = vpop.f32.mrf.mxu0  ;;  %v1134_v12 = vld [vmem:[#allocation2 + $0x21] sm:$0xff] }
  0xdb   : > { %v1234_v13 = vld [vmem:[#allocation2 + $0x22] sm:$0xff]  ;;  %703 = vst.msk [vmem:[#allocation2 + $0x51] sm:$0xff] %vm641_vm1, %v508_v8  ;;  %v503_v14 = vadd.f32 %v2741_v41, %v502_v11  ;;  %v1170_v24 = vmul.f32 %v2767_v5, %v1134_v12  ;;  %v872_v29 = vmul.f32 %v1134_v12, %v2745_v43 }
  0xdc   : > { %v2410_v17 = vpop.f32.mrf.mxu0  ;;  %v1033_v18 = vld [vmem:[#allocation2 + $0x18] sm:$0xff]  ;;  %v1034_v27 = vld [vmem:[#allocation2 + $0x20] sm:$0xff]  ;;  %v1270_v28 = vmul.f32 %v2774_v10, %v1234_v13  ;;  %v972_v36 = vmul.f32 %v1234_v13, %v2752_v55 }
  0xdd   : > { %v1133_v19 = vld [vmem:[#allocation2 + $0x19] sm:$0xff]  ;;  %702 = vst.msk [vmem:[#allocation2 + $0x49] sm:$0xff] %vm641_vm1, %v503_v14  ;;  %v518_v25 = vadd.f32 %v2410_v17, %v2741_v41  ;;  %v1069_v26 = vmul.f32 %v2772_v9, %v1033_v18  ;;  %v1070_v31 = vmul.f32 %v2772_v9, %v1034_v27  ;;  %v771_v34 = vmul.f32 %v1033_v18, %v2743_v42 }
  0xde   : > { %v1233_v20 = vld [vmem:[#allocation2 + $0x1a] sm:$0xff]  ;;  %v512_v30 = vpop.f32.mrf.mxu0  ;;  %v871_v35 = vmul.f32 %v1133_v19, %v2745_v43  ;;  %v1169_v39 = vmul.f32 %v2767_v5, %v1133_v19  ;;  %v772_v50 = vmul.f32 %v1034_v27, %v2743_v42 }
  0xdf   : > { %v2791_v32 = vld [vmem:[#allocation2 + $0x39] sm:$0xff]  ;;  %705 = vst.msk [vmem:[#allocation2 + $0x69] sm:$0xff] %vm641_vm1, %v518_v25  ;;  %v513_v37 = vadd.f32 %v2741_v41, %v512_v30  ;;  %v1101_v38 = vadd.f32 %v1069_v26, %v1001_v15  ;;  %v1269_v40 = vmul.f32 %v2774_v10, %v1233_v20  ;;  %v1102_v47 = vadd.f32 %v1070_v31, %v1002_v23 }
  0xe0   : > { %v2793_v33 = vld [vmem:[#allocation2 + $0x3a] sm:$0xff]  ;;  %v2413_v44 = vpop.f32.mrf.mxu0  ;;  %v1334_v45 = vld [vmem:[#allocation2 + $0x30] sm:$0xff]  ;;  %v903_v48 = vadd.f32 %v871_v35, %v771_v34  ;;  %v971_v49 = vmul.f32 %v1233_v20, %v2752_v55  ;;  %v1471_v54 = vmul.f32 %v2778_v16, %v2791_v32  ;;  %v1172_v61 = vmul.f32 %v2791_v32, %v2767_v5 }
  0xe1   : > { %v1434_v46 = vld [vmem:[#allocation2 + $0x31] sm:$0xff]  ;;  %704 = vst.msk [vmem:[#allocation2 + $0x61] sm:$0xff] %vm641_vm1, %v513_v37  ;;  %v528_v51 = vadd.f32 %v2413_v44, %v2741_v41  ;;  %v1201_v52 = vadd.f32 %v1169_v39, %v1101_v38  ;;  %v1571_v56 = vmul.f32 %v2782_v22, %v2793_v33  ;;  %v1370_v58 = vmul.f32 %v2780_v21, %v1334_v45  ;;  %v2841_v31 = vld [vmem:[%s3745_s4] ss:$0 sm:$0xff] }
  0xe2   : > { %v2806_v53 = vld [vmem:[#allocation2 + $0x38] sm:$0xff]  ;;  %v522_v57 = vpop.f32.mrf.mxu0  ;;  %v1202_v59 = vadd.f32 %v1170_v24, %v1102_v47  ;;  %v1003_v60 = vadd.f32 %v971_v49, %v903_v48  ;;  %v1470_v0 = vmul.f32 %v2778_v16, %v1434_v46  ;;  %v1071_v2 = vmul.f32 %v1334_v45, %v2772_v9 }
  0xe3   : > { %707 = vst.msk [vmem:[#allocation2 + $0x81] sm:$0xff] %vm641_vm1, %v528_v51  ;;  %v523_v62 = vadd.f32 %v2741_v41, %v522_v57  ;;  %v1301_v63 = vadd.f32 %v1269_v40, %v1201_v52  ;;  %v1534_v1 = vld [vmem:[#allocation2 + $0x32] sm:$0xff]  ;;  %v1371_v6 = vmul.f32 %v2780_v21, %v2806_v53  ;;  %v904_v8 = vadd.f32 %v872_v29, %v772_v50 }
  0xe4   : > { %v2416_v3 = vpop.f32.mrf.mxu0  ;;  %v1302_v4 = vadd.f32 %v1270_v28, %v1202_v59  ;;  %v2821_v7 = vld [vmem:[#allocation2 + $0x48] sm:$0xff]  ;;  %v1072_v11 = vmul.f32 %v2806_v53, %v2772_v9  ;;  %v1103_v14 = vadd.f32 %v1071_v2, %v1003_v60  ;;  %v1171_v15 = vmul.f32 %v1434_v46, %v2767_v5  ;;  %v2832_v25 = vld [vmem:[#allocation2 + $0x50] sm:$0xff] }
  0xe5   : > { %706 = vst.msk [vmem:[#allocation2 + $0x79] sm:$0xff] %vm641_vm1, %v523_v62  ;;  %v538_v12 = vadd.f32 %v2416_v3, %v2741_v41  ;;  %v1402_v13 = vadd.f32 %v1370_v58, %v1301_v63  ;;  %v2828_v17 = vld [vmem:[#allocation2 + $0x49] sm:$0xff]  ;;  %v1570_v19 = vmul.f32 %v2782_v22, %v1534_v1  ;;  %v1271_v23 = vmul.f32 %v1534_v1, %v2774_v10  ;;  %v2858_v59 = vld [vmem:[#allocation2 + $0x51] sm:$0xff] }
  0xe6   : > { %v532_v18 = vpop.f32.mrf.mxu0  ;;  %v1403_v20 = vadd.f32 %v1371_v6, %v1302_v4  ;;  %v1004_v24 = vadd.f32 %v972_v36, %v904_v8  ;;  %v1203_v28 = vadd.f32 %v1171_v15, %v1103_v14  ;;  %v1372_v29 = vmul.f32 %v2780_v21, %v2821_v7  ;;  %v2851_v49 = vld [vmem:[#allocation2 + $0x4a] sm:$0xff] }
  0xe7   : > { %709 = vst.msk [vmem:[#allocation2 + $0x99] sm:$0xff] %vm641_vm1, %v538_v12  ;;  %v533_v26 = vadd.f32 %v2741_v41, %v532_v18  ;;  %v1502_v27 = vadd.f32 %v1470_v0, %v1402_v13  ;;  %v1472_v35 = vmul.f32 %v2778_v16, %v2828_v17  ;;  %v1272_v37 = vmul.f32 %v2793_v33, %v2774_v10 }
  0xe8   : > { %v2419_v30 = vpop.f32.mrf.mxu0  ;;  %v1503_v34 = vadd.f32 %v1471_v54, %v1403_v20  ;;  %v1104_v36 = vadd.f32 %v1072_v11, %v1004_v24  ;;  %v1303_v40 = vadd.f32 %v1271_v23, %v1203_v28  ;;  %v1373_v44 = vmul.f32 %v2780_v21, %v2832_v25 }
  0xe9   : > { %708 = vst.msk [vmem:[#allocation2 + $0x91] sm:$0xff] %vm641_vm1, %v533_v26  ;;  %v548_v38 = vadd.f32 %v2419_v30, %v2741_v41  ;;  %v1602_v39 = vadd.f32 %v1570_v19, %v1502_v27  ;;  %v773_v51 = vmul.f32 %v1334_v45, %v2743_v42  ;;  %v873_v52 = vmul.f32 %v1434_v46, %v2745_v43  ;;  %v2878_v27 = vld [vmem:[#allocation2 + $0x60] sm:$0xff] }
  0xea   : > { %v542_v47 = vpop.f32.mrf.mxu0  ;;  %v1603_v48 = vadd.f32 %v1571_v56, %v1503_v34  ;;  %v1204_v50 = vadd.f32 %v1172_v61, %v1104_v36  ;;  %v1404_v58 = vadd.f32 %v1372_v29, %v1303_v40  ;;  %v973_v60 = vmul.f32 %v1534_v1, %v2752_v55  ;;  %v2862_v61 = vld [vmem:[#allocation2 + $0x52] sm:$0xff] }
  0xeb   : > { %711 = vst.msk [vmem:[#allocation2 + $0xb1] sm:$0xff] %vm641_vm1, %v548_v38  ;;  %v543_v54 = vadd.f32 %v2741_v41, %v542_v47  ;;  %v1641_v57 = vadd.f32 %v2841_v31, %v1602_v39  ;;  %v905_v45 = vadd.f32 %v873_v52, %v773_v51  ;;  %v1073_v46 = vmul.f32 %v2821_v7, %v2772_v9  ;;  %v2889_v38 = vld [vmem:[#allocation2 + $0x61] sm:$0xff] }
  0xec   : > { %v2422_v62 = vpop.f32.mrf.mxu0  ;;  %v1642_v56 = vadd.f32 %v2841_v31, %v1603_v48  ;;  %v1304_v63 = vadd.f32 %v1272_v37, %v1204_v50  ;;  %v1504_v3 = vadd.f32 %v1472_v35, %v1404_v58  ;;  %v1572_v4 = vmul.f32 %v2782_v22, %v2851_v49  ;;  %v2897_v47 = vld [vmem:[#allocation2 + $0x62] sm:$0xff] }
  0xed   : > { %710 = vst.msk [vmem:[#allocation2 + $0xa9] sm:$0xff] %vm641_vm1, %v543_v54  ;;  %v558_v0 = vadd.f32 %v2422_v62, %v2741_v41  ;;  %v1673_v2 = vmax.f32 %v1641_v57, 0.0  ;;  %v1473_v11 = vmul.f32 %v2778_v16, %v2858_v59  ;;  %v1005_v12 = vadd.f32 %v973_v60, %v905_v45 }
  0xee   : > { %v552_v1 = vpop.f32.mrf.mxu0  ;;  %v1674_v6 = vmax.f32 %v1642_v56, 0.0  ;;  %v1405_v8 = vadd.f32 %v1373_v44, %v1304_v63  ;;  %v1604_v15 = vadd.f32 %v1572_v4, %v1504_v3  ;;  %v1573_v18 = vmul.f32 %v2782_v22, %v2862_v61  ;;  %v2917_v3 = vld [vmem:[#allocation2 + $0x69] sm:$0xff] }
  0xef   : > { %713 = vst.msk [vmem:[#allocation2 + $0xc9] sm:$0xff] %vm641_vm1, %v558_v0  ;;  %v553_v13 = vadd.f32 %v2741_v41, %v552_v1  ;;  %v1705_v14 = vmin.f32 %v1673_v2, 6.0  ;;  %v1105_v24 = vadd.f32 %v1073_v46, %v1005_v12  ;;  %v1173_v26 = vmul.f32 %v2828_v17, %v2767_v5  ;;  %v2915_v2 = vld [vmem:[#allocation2 + $0x68] sm:$0xff] }
  0xf0   : > { %v2425_v19 = vpop.f32.mrf.mxu0  ;;  %v1706_v20 = vmin.f32 %v1674_v6, 6.0  ;;  %v1505_v23 = vadd.f32 %v1473_v11, %v1405_v8  ;;  %v1643_v29 = vadd.f32 %v2841_v31, %v1604_v15  ;;  %v774_v30 = vmul.f32 %v2806_v53, %v2743_v42 }
  0xf1   : > { %712 = vst.msk [vmem:[#allocation2 + $0xc1] sm:$0xff] %vm641_vm1, %v553_v13  ;;  %v568_v28 = vadd.f32 %v2425_v19, %v2741_v41  ;;  %2451 = vmatprep.mubr.msk.f32.mxu1 %vm641_vm1, %v1705_v14  ;;  %v1205_v36 = vadd.f32 %v1173_v26, %v1105_v24  ;;  %v1273_v37 = vmul.f32 %v2851_v49, %v2774_v10  ;;  %v2925_v14 = vld [vmem:[#allocation2 + $0x6a] sm:$0xff] }
  0xf2   : > { %v562_v34 = vpop.f32.mrf.mxu0  ;;  %2452 = vmatmul.mubr.msk.f32.vlgmr.msra.gmra.mxu1 %vm641_vm1, %v1706_v20  ;;  %v1605_v35 = vadd.f32 %v1573_v18, %v1505_v23  ;;  %v874_v39 = vmul.f32 %v2791_v32, %v2745_v43  ;;  %v1675_v44 = vmax.f32 %v1643_v29, 0.0  ;;  %v1374_v53 = vmul.f32 %v2780_v21, %v2878_v27 }
  0xf3   : > { %715 = vst.msk [vmem:[#allocation2 + $0xe1] sm:$0xff] %vm641_vm1, %v568_v28  ;;  %v563_v40 = vadd.f32 %v2741_v41, %v562_v34  ;;  %v974_v48 = vmul.f32 %v2793_v33, %v2752_v55  ;;  %v1305_v52 = vadd.f32 %v1273_v37, %v1205_v36  ;;  %v1074_v32 = vmul.f32 %v2832_v25, %v2772_v9 }
  0xf4   : > { %v2428_v50 = vpop.f32.mrf.mxu0  ;;  %v1644_v51 = vadd.f32 %v2841_v31, %v1605_v35  ;;  %v906_v54 = vadd.f32 %v874_v39, %v774_v30  ;;  %v1707_v58 = vmin.f32 %v1675_v44, 6.0  ;;  %v1474_v60 = vmul.f32 %v2778_v16, %v2889_v38  ;;  %v2947_v39 = vld [vmem:[#allocation2 + $0x78] sm:$0xff] }
  0xf5   : > { %714 = vst.msk [vmem:[#allocation2 + $0xd9] sm:$0xff] %vm641_vm1, %v563_v40  ;;  %v578_v57 = vadd.f32 %v2428_v50, %v2741_v41  ;;  %v1406_v63 = vadd.f32 %v1374_v53, %v1305_v52  ;;  %v1574_v33 = vmul.f32 %v2782_v22, %v2897_v47  ;;  %v1174_v0 = vmul.f32 %v2858_v59, %v2767_v5  ;;  %v2949_v40 = vld [vmem:[#allocation2 + $0x79] sm:$0xff] }
  0xf6   : > { %v572_v62 = vpop.f32.mrf.mxu0  ;;  %v1676_v56 = vmax.f32 %v1644_v51, 0.0  ;;  %v1006_v45 = vadd.f32 %v974_v48, %v906_v54  ;;  %2454 = vmatprep.mubr.msk.f32.mxu1 %vm641_vm1, %v1707_v58  ;;  %v775_v4 = vmul.f32 %v2821_v7, %v2743_v42  ;;  %v875_v1 = vmul.f32 %v2828_v17, %v2745_v43  ;;  %v2957_v50 = vld [vmem:[#allocation2 + $0x7a] sm:$0xff] }
  0xf7   : > { %717 = vst.msk [vmem:[#allocation2 + $0xf9] sm:$0xff] %vm641_vm1, %v578_v57  ;;  %v573_v46 = vadd.f32 %v2741_v41, %v572_v62  ;;  %v1506_v11 = vadd.f32 %v1474_v60, %v1406_v63  ;;  %v1274_v13 = vmul.f32 %v2862_v61, %v2774_v10  ;;  %v975_v7 = vmul.f32 %v2851_v49, %v2752_v55 }
  0xf8   : > { %v1708_v6 = vmin.f32 %v1676_v56, 6.0  ;;  %v2431_v8 = vpop.f32.mrf.mxu0  ;;  %v1106_v12 = vadd.f32 %v1074_v32, %v1006_v45  ;;  %v907_v18 = vadd.f32 %v875_v1, %v775_v4  ;;  %v1075_v17 = vmul.f32 %v2878_v27, %v2772_v9  ;;  %v2972_v4 = vld [vmem:[#allocation2 + $0x80] sm:$0xff] }
  0xf9   : > { %716 = vst.msk [vmem:[#allocation2 + $0xf1] sm:$0xff] %vm641_vm1, %v573_v46  ;;  %v588_v15 = vadd.f32 %v2431_v8, %v2741_v41  ;;  %v1606_v19 = vadd.f32 %v1574_v33, %v1506_v11  ;;  %v1375_v24 = vmul.f32 %v2780_v21, %v2915_v2  ;;  %v1475_v26 = vmul.f32 %v2778_v16, %v2917_v3  ;;  %v2974_v1 = vld [vmem:[#allocation2 + $0x81] sm:$0xff] }
  0xfa   : > { %2455 = vmatmul.mubr.msk.f32.gmra.mxu1 %vm641_vm1, %v1708_v6  ;;  %v582_v20 = vpop.f32.mrf.mxu0  ;;  %v1206_v23 = vadd.f32 %v1174_v0, %v1106_v12  ;;  %v1575_v49 = vmul.f32 %v2782_v22, %v2925_v14  ;;  %v1007_v29 = vadd.f32 %v975_v7, %v907_v18  ;;  %v776_v30 = vmul.f32 %v2832_v25, %v2743_v42  ;;  %v2986_v7 = vld [vmem:[#allocation2 + $0x82] sm:$0xff] }
  0xfb   : > { %719 = vst.msk [vmem:[#allocation2 + $0x111] sm:$0xff] %vm641_vm1, %v588_v15  ;;  %v583_v28 = vadd.f32 %v2741_v41, %v582_v20  ;;  %v1645_v34 = vadd.f32 %v2841_v31, %v1606_v19  ;;  %v1175_v37 = vmul.f32 %v2889_v38, %v2767_v5  ;;  %v876_v44 = vmul.f32 %v2858_v59, %v2745_v43 }
  0xfc   : > { %v1306_v35 = vadd.f32 %v1274_v13, %v1206_v23  ;;  %v2434_v36 = vpop.f32.mrf.mxu0  ;;  %v1107_v48 = vadd.f32 %v1075_v17, %v1007_v29  ;;  %v1275_v25 = vmul.f32 %v2897_v47, %v2774_v10  ;;  %v976_v51 = vmul.f32 %v2862_v61, %v2752_v55 }
  0xfd   : > { %718 = vst.msk [vmem:[#allocation2 + $0x109] sm:$0xff] %vm641_vm1, %v583_v28  ;;  %v598_v53 = vadd.f32 %v2434_v36, %v2741_v41  ;;  %v1677_v52 = vmax.f32 %v1645_v34, 0.0  ;;  %v908_v57 = vadd.f32 %v876_v44, %v776_v30  ;;  %v1076_v59 = vmul.f32 %v2915_v2, %v2772_v9  ;;  %v3001_v36 = vld [vmem:[#allocation2 + $0x90] sm:$0xff] }
  0xfe   : > { %v1407_v54 = vadd.f32 %v1375_v24, %v1306_v35  ;;  %v592_v32 = vpop.f32.mrf.mxu0  ;;  %v1207_v58 = vadd.f32 %v1175_v37, %v1107_v48  ;;  %v1376_v60 = vmul.f32 %v2780_v21, %v2947_v39  ;;  %v1476_v62 = vmul.f32 %v2778_v16, %v2949_v40 }
  0xff   : > { %721 = vst.msk [vmem:[#allocation2 + $0x129] sm:$0xff] %vm641_vm1, %v598_v53  ;;  %v593_v56 = vadd.f32 %v2741_v41, %v592_v32  ;;  %v1709_v63 = vmin.f32 %v1677_v52, 6.0  ;;  %v1576_v33 = vmul.f32 %v2782_v22, %v2957_v50  ;;  %v1008_v45 = vadd.f32 %v976_v51, %v908_v57  ;;  %v3009_v51 = vld [vmem:[#allocation2 + $0x91] sm:$0xff] }
 0x100   : > { %v1507_v61 = vadd.f32 %v1475_v26, %v1407_v54  ;;  %v2437_v46 = vpop.f32.mrf.mxu0  ;;  %v1307_v0 = vadd.f32 %v1275_v25, %v1207_v58  ;;  %v777_v8 = vmul.f32 %v2878_v27, %v2743_v42  ;;  %v877_v11 = vmul.f32 %v2889_v38, %v2745_v43  ;;  %v3011_v52 = vld [vmem:[#allocation2 + $0x92] sm:$0xff] }
 0x101   : > { %720 = vst.msk [vmem:[#allocation2 + $0x121] sm:$0xff] %vm641_vm1, %v593_v56  ;;  %v608_v6 = vadd.f32 %v2437_v46, %v2741_v41  ;;  %2457 = vmatprep.mubr.msk.f32.mxu1 %vm641_vm1, %v1709_v63  ;;  %v1108_v13 = vadd.f32 %v1076_v59, %v1008_v45  ;;  %v1176_v15 = vmul.f32 %v2917_v3, %v2767_v5 }
 0x102   : > { %v1607_v12 = vadd.f32 %v1575_v49, %v1507_v61  ;;  %v1276_v18 = vmul.f32 %v2925_v14, %v2774_v10  ;;  %v602_v17 = vpop.f32.mrf.mxu0  ;;  %v1408_v19 = vadd.f32 %v1376_v60, %v1307_v0  ;;  %v909_v27 = vadd.f32 %v877_v11, %v777_v8 }
 0x103   : > { %723 = vst.msk [vmem:[#allocation2 + $0x141] sm:$0xff] %vm641_vm1, %v608_v6  ;;  %v977_v38 = vmul.f32 %v2897_v47, %v2752_v55  ;;  %v1077_v20 = vmul.f32 %v2947_v39, %v2772_v9  ;;  %v1208_v24 = vadd.f32 %v1176_v15, %v1108_v13  ;;  %v1377_v26 = vmul.f32 %v2780_v21, %v2972_v4  ;;  %v3033_v13 = vld [vmem:[#allocation2 + $0x98] sm:$0xff] }
 0x104   : > { %v1646_v23 = vadd.f32 %v2841_v31, %v1607_v12  ;;  %v1477_v28 = vmul.f32 %v2778_v16, %v2974_v1  ;;  %v1508_v49 = vadd.f32 %v1476_v62, %v1408_v19  ;;  %v1577_v29 = vmul.f32 %v2782_v22, %v2986_v7  ;;  %v2440_v59 = vpop.f32.mrf.mxu0  ;;  %v3035_v15 = vld [vmem:[#allocation2 + $0x99] sm:$0xff] }
 0x105   : > { %v1009_v30 = vadd.f32 %v977_v38, %v909_v27  ;;  %v603_v34 = vadd.f32 %v2741_v41, %v602_v17  ;;  %v1308_v35 = vadd.f32 %v1276_v18, %v1208_v24  ;;  %v778_v37 = vmul.f32 %v2915_v2, %v2743_v42  ;;  %v3037_v18 = vld [vmem:[#allocation2 + $0x9a] sm:$0xff] }
 0x106   : > { %v1678_v47 = vmax.f32 %v1646_v23, 0.0  ;;  %v878_v44 = vmul.f32 %v2917_v3, %v2745_v43  ;;  %v1608_v53 = vadd.f32 %v1576_v33, %v1508_v49  ;;  %v1177_v25 = vmul.f32 %v2949_v40, %v2767_v5 }
 0x107   : > { %v1109_v48 = vadd.f32 %v1077_v20, %v1009_v30  ;;  %722 = vst.msk [vmem:[#allocation2 + $0x139] sm:$0xff] %vm641_vm1, %v603_v34  ;;  %v978_v54 = vmul.f32 %v2925_v14, %v2752_v55  ;;  %v1409_v57 = vadd.f32 %v1377_v26, %v1308_v35  ;;  %v1078_v3 = vmul.f32 %v2972_v4, %v2772_v9  ;;  %v612_v20 = vpop.f32.mrf.mxu0 }
 0x108   : > { %v1710_v32 = vmin.f32 %v1678_v47, 6.0  ;;  %v910_v2 = vadd.f32 %v878_v44, %v778_v37  ;;  %v1647_v58 = vadd.f32 %v2841_v31, %v1608_v53  ;;  %v1277_v62 = vmul.f32 %v2957_v50, %v2774_v10  ;;  %v3059_v53 = vld [vmem:[#allocation2 + $0xa8] sm:$0xff] }
 0x109   : > { %v1209_v60 = vadd.f32 %v1177_v25, %v1109_v48  ;;  %v1378_v56 = vmul.f32 %v2780_v21, %v3001_v36  ;;  %v1509_v63 = vadd.f32 %v1477_v28, %v1409_v57  ;;  %v1478_v14 = vmul.f32 %v2778_v16, %v3009_v51  ;;  %v3061_v48 = vld [vmem:[#allocation2 + $0xa9] sm:$0xff] }
 0x10a   : > { %2458 = vmatmul.mubr.msk.f32.gmra.mxu1 %vm641_vm1, %v1710_v32  ;;  %v1578_v61 = vmul.f32 %v2782_v22, %v3011_v52  ;;  %v1010_v33 = vadd.f32 %v978_v54, %v910_v2  ;;  %v1679_v45 = vmax.f32 %v1647_v58, 0.0  ;;  %v618_v0 = vadd.f32 %v2440_v59, %v2741_v41  ;;  %v3069_v59 = vld [vmem:[#allocation2 + $0xaa] sm:$0xff]  ;;  %v2443_v58 = vpop.f32.mrf.mxu0 }
 0x10b   : > { %v1309_v46 = vadd.f32 %v1277_v62, %v1209_v60  ;;  %v779_v6 = vmul.f32 %v2947_v39, %v2743_v42  ;;  %v1609_v8 = vadd.f32 %v1577_v29, %v1509_v63  ;;  %v1178_v12 = vmul.f32 %v2974_v1, %v2767_v5 }
 0x10c   : > { %v1110_v11 = vadd.f32 %v1078_v3, %v1010_v33  ;;  %v879_v17 = vmul.f32 %v2949_v40, %v2745_v43  ;;  %v1711_v19 = vmin.f32 %v1679_v45, 6.0  ;;  %v1278_v38 = vmul.f32 %v2986_v7, %v2774_v10  ;;  %725 = vst.msk [vmem:[#allocation2 + $0x159] sm:$0xff] %vm641_vm1, %v618_v0 }
 0x10d   : > { %v1410_v27 = vadd.f32 %v1378_v56, %v1309_v46  ;;  %v979_v39 = vmul.f32 %v2957_v50, %v2752_v55  ;;  %v1648_v23 = vadd.f32 %v2841_v31, %v1609_v8  ;;  %v1079_v28 = vmul.f32 %v3001_v36, %v2772_v9  ;;  %v3085_v8 = vld [vmem:[#allocation2 + $0xb0] sm:$0xff] }
 0x10e   : > { %v1210_v24 = vadd.f32 %v1178_v12, %v1110_v11  ;;  %v911_v26 = vadd.f32 %v879_v17, %v779_v6  ;;  %2460 = vmatprep.mubr.msk.f32.mxu1 %vm641_vm1, %v1711_v19  ;;  %v1379_v49 = vmul.f32 %v2780_v21, %v3033_v13  ;;  %v1479_v29 = vmul.f32 %v2778_v16, %v3035_v15  ;;  %v3087_v11 = vld [vmem:[#allocation2 + $0xb1] sm:$0xff] }
 0x10f   : > { %v1510_v40 = vadd.f32 %v1478_v14, %v1410_v27  ;;  %v1579_v50 = vmul.f32 %v2782_v22, %v3037_v18  ;;  %v1680_v30 = vmax.f32 %v1648_v23, 0.0  ;;  %v613_v35 = vadd.f32 %v2741_v41, %v612_v20 }
 0x110   : > { %v1310_v34 = vadd.f32 %v1278_v38, %v1210_v24  ;;  %v1011_v47 = vadd.f32 %v979_v39, %v911_v26  ;;  %v1179_v44 = vmul.f32 %v3009_v51, %v2767_v5  ;;  %v780_v25 = vmul.f32 %v2972_v4, %v2743_v42  ;;  %v3095_v39 = vld [vmem:[#allocation2 + $0xb2] sm:$0xff] }
 0x111   : > { %v1610_v37 = vadd.f32 %v1578_v61, %v1510_v40  ;;  %v880_v54 = vmul.f32 %v2974_v1, %v2745_v43  ;;  %v1712_v32 = vmin.f32 %v1680_v30, 6.0  ;;  %v1279_v3 = vmul.f32 %v3011_v52, %v2774_v10  ;;  %724 = vst.msk [vmem:[#allocation2 + $0x151] sm:$0xff] %vm641_vm1, %v613_v35  ;;  %v3112_v35 = vld [vmem:[#allocation2 + $0xc0] sm:$0xff] }
 0x112   : > { %v1411_v57 = vadd.f32 %v1379_v49, %v1310_v34  ;;  %v1111_v2 = vadd.f32 %v1079_v28, %v1011_v47  ;;  %v980_v4 = vmul.f32 %v2986_v7, %v2752_v55  ;;  %v1080_v1 = vmul.f32 %v3033_v13, %v2772_v9 }
 0x113   : > { %v1649_v60 = vadd.f32 %v2841_v31, %v1610_v37  ;;  %v912_v62 = vadd.f32 %v880_v54, %v780_v25  ;;  %2461 = vmatmul.mubr.msk.f32.gmra.mxu1 %vm641_vm1, %v1712_v32  ;;  %v1380_v14 = vmul.f32 %v2780_v21, %v3059_v53  ;;  %v1480_v61 = vmul.f32 %v2778_v16, %v3061_v48 }
 0x114   : > { %v1511_v56 = vadd.f32 %v1479_v29, %v1411_v57  ;;  %v1211_v63 = vadd.f32 %v1179_v44, %v1111_v2  ;;  %v1580_v45 = vmul.f32 %v2782_v22, %v3069_v59  ;;  %v628_v7 = vadd.f32 %v2443_v58, %v2741_v41  ;;  %v3123_v58 = vld [vmem:[#allocation2 + $0xc2] sm:$0xff] }
 0x115   : > { %v1681_v33 = vmax.f32 %v1649_v60, 0.0  ;;  %v1012_v46 = vadd.f32 %v980_v4, %v912_v62  ;;  %v781_v12 = vmul.f32 %v3001_v36, %v2743_v42  ;;  %v881_v17 = vmul.f32 %v3009_v51, %v2745_v43  ;;  %v622_v51 = vpop.f32.mrf.mxu0 }
 0x116   : > { %v1611_v0 = vadd.f32 %v1579_v50, %v1511_v56  ;;  %v1311_v6 = vadd.f32 %v1279_v3, %v1211_v63  ;;  %v1180_v38 = vmul.f32 %v3035_v15, %v2767_v5  ;;  %727 = vst.msk [vmem:[#allocation2 + $0x171] sm:$0xff] %vm641_vm1, %v628_v7  ;;  %v981_v20 = vmul.f32 %v3011_v52, %v2752_v55  ;;  %v3121_v3 = vld [vmem:[#allocation2 + $0xc1] sm:$0xff] }
 0x117   : > { %v1713_v19 = vmin.f32 %v1681_v33, 6.0  ;;  %v1112_v27 = vadd.f32 %v1080_v1, %v1012_v46  ;;  %v913_v26 = vadd.f32 %v881_v17, %v781_v12  ;;  %v1081_v36 = vmul.f32 %v3059_v53, %v2772_v9  ;;  %v2446_v4 = vpop.f32.mrf.mxu0 }
 0x118   : > { %v1650_v23 = vadd.f32 %v2841_v31, %v1611_v0  ;;  %v1412_v24 = vadd.f32 %v1380_v14, %v1311_v6  ;;  %v1280_v40 = vmul.f32 %v3037_v18, %v2774_v10  ;;  %v1381_v49 = vmul.f32 %v2780_v21, %v3085_v8 }
 0x119   : > { %2463 = vmatprep.mubr.msk.f32.mxu1 %vm641_vm1, %v1713_v19  ;;  %v1212_v28 = vadd.f32 %v1180_v38, %v1112_v27  ;;  %v1481_v52 = vmul.f32 %v2778_v16, %v3087_v11  ;;  %v1581_v30 = vmul.f32 %v2782_v22, %v3095_v39  ;;  %v1013_v34 = vadd.f32 %v981_v20, %v913_v26  ;;  %v3145_v27 = vld [vmem:[#allocation2 + $0xc8] sm:$0xff] }
 0x11a   : > { %v1682_v29 = vmax.f32 %v1650_v23, 0.0  ;;  %v1512_v50 = vadd.f32 %v1480_v61, %v1412_v24  ;;  %v623_v37 = vadd.f32 %v2741_v41, %v622_v51  ;;  %v782_v44 = vmul.f32 %v3033_v13, %v2743_v42  ;;  %v3147_v38 = vld [vmem:[#allocation2 + $0xc9] sm:$0xff]  ;;  %v632_v51 = vpop.f32.mrf.mxu0 }
 0x11b   : > { %v1312_v47 = vadd.f32 %v1280_v40, %v1212_v28  ;;  %v882_v25 = vmul.f32 %v3035_v15, %v2745_v43  ;;  %v1113_v57 = vadd.f32 %v1081_v36, %v1013_v34  ;;  %v1181_v2 = vmul.f32 %v3061_v48, %v2767_v5  ;;  %v3149_v20 = vld [vmem:[#allocation2 + $0xca] sm:$0xff] }
 0x11c   : > { %v1714_v54 = vmin.f32 %v1682_v29, 6.0  ;;  %v1612_v32 = vadd.f32 %v1580_v45, %v1512_v50  ;;  %726 = vst.msk [vmem:[#allocation2 + $0x169] sm:$0xff] %vm641_vm1, %v623_v37  ;;  %v982_v13 = vmul.f32 %v3037_v18, %v2752_v55  ;;  %v1082_v15 = vmul.f32 %v3085_v8, %v2772_v9 }
 0x11d   : > { %v1413_v60 = vadd.f32 %v1381_v49, %v1312_v47  ;;  %v914_v62 = vadd.f32 %v882_v25, %v782_v44  ;;  %v1213_v56 = vadd.f32 %v1181_v2, %v1113_v57  ;;  %v1281_v63 = vmul.f32 %v3069_v59, %v2774_v10 }
 0x11e   : > { %2464 = vmatmul.mubr.msk.f32.gmra.mxu1 %vm641_vm1, %v1714_v54  ;;  %v1651_v1 = vadd.f32 %v2841_v31, %v1612_v32  ;;  %v1382_v14 = vmul.f32 %v2780_v21, %v3112_v35  ;;  %v1482_v33 = vmul.f32 %v2778_v16, %v3121_v3  ;;  %v1582_v18 = vmul.f32 %v2782_v22, %v3123_v58  ;;  %v3171_v54 = vld [vmem:[#allocation2 + $0xd8] sm:$0xff] }
 0x11f   : > { %v1513_v61 = vadd.f32 %v1481_v52, %v1413_v60  ;;  %v1014_v45 = vadd.f32 %v982_v13, %v914_v62  ;;  %v1313_v7 = vadd.f32 %v1281_v63, %v1213_v56  ;;  %v638_v0 = vadd.f32 %v2446_v4, %v2741_v41  ;;  %v3173_v32 = vld [vmem:[#allocation2 + $0xd9] sm:$0xff] }
 0x120   : > { %v1683_v46 = vmax.f32 %v1651_v1, 0.0  ;;  %v783_v6 = vmul.f32 %v3059_v53, %v2743_v42  ;;  %v1182_v19 = vmul.f32 %v3087_v11, %v2767_v5  ;;  %v883_v23 = vmul.f32 %v3061_v48, %v2745_v43 }
 0x121   : > { %v1613_v12 = vadd.f32 %v1581_v30, %v1513_v61  ;;  %v1114_v17 = vadd.f32 %v1082_v15, %v1014_v45  ;;  %v1414_v26 = vadd.f32 %v1382_v14, %v1313_v7  ;;  %v1282_v36 = vmul.f32 %v3095_v39, %v2774_v10  ;;  %729 = vst.msk [vmem:[#allocation2 + $0x189] sm:$0xff] %vm641_vm1, %v638_v0  ;;  %v3181_v15 = vld [vmem:[#allocation2 + $0xda] sm:$0xff] }
 0x122   : > { %v1715_v24 = vmin.f32 %v1683_v46, 6.0  ;;  %v983_v53 = vmul.f32 %v3069_v59, %v2752_v55  ;;  %v915_v49 = vadd.f32 %v883_v23, %v783_v6  ;;  %v1083_v52 = vmul.f32 %v3112_v35, %v2772_v9  ;;  %v3200_v6 = vld [vmem:[#allocation2 + $0xe0] sm:$0xff] }
 0x123   : > { %v1652_v28 = vadd.f32 %v2841_v31, %v1613_v12  ;;  %v1214_v40 = vadd.f32 %v1182_v19, %v1114_v17  ;;  %v1514_v48 = vadd.f32 %v1482_v33, %v1414_v26  ;;  %v1383_v29 = vmul.f32 %v2780_v21, %v3145_v27  ;;  %v3202_v12 = vld [vmem:[#allocation2 + $0xe1] sm:$0xff] }
 0x124   : > { %2466 = vmatprep.mubr.msk.f32.mxu1 %vm641_vm1, %v1715_v24  ;;  %v1483_v50 = vmul.f32 %v2778_v16, %v3147_v38  ;;  %v1583_v59 = vmul.f32 %v2782_v22, %v3149_v20  ;;  %v1015_v47 = vadd.f32 %v983_v53, %v915_v49  ;;  %v633_v37 = vadd.f32 %v2741_v41, %v632_v51  ;;  %v3204_v17 = vld [vmem:[#allocation2 + $0xe2] sm:$0xff] }
 0x125   : > { %v1684_v30 = vmax.f32 %v1652_v28, 0.0  ;;  %v1314_v34 = vadd.f32 %v1282_v36, %v1214_v40  ;;  %v1614_v44 = vadd.f32 %v1582_v18, %v1514_v48  ;;  %v1183_v25 = vmul.f32 %v3121_v3, %v2767_v5 }
 0x126   : > { %v784_v57 = vmul.f32 %v3085_v8, %v2743_v42  ;;  %v884_v2 = vmul.f32 %v3087_v11, %v2745_v43  ;;  %v1115_v13 = vadd.f32 %v1083_v52, %v1015_v47  ;;  %v1283_v41 = vmul.f32 %v3123_v58, %v2774_v10  ;;  %728 = vst.msk [vmem:[#allocation2 + $0x181] sm:$0xff] %vm641_vm1, %v633_v37  ;;  %v3230_v37 = vld [vmem:[#allocation2 + $0xf1] sm:$0xff] }
 0x127   : > { %v1716_v60 = vmin.f32 %v1684_v30, 6.0  ;;  %v1415_v62 = vadd.f32 %v1383_v29, %v1314_v34  ;;  %v1653_v4 = vadd.f32 %v2841_v31, %v1614_v44  ;;  %v984_v56 = vmul.f32 %v3095_v39, %v2752_v55  ;;  %v3232_v44 = vld [vmem:[#allocation2 + $0xf2] sm:$0xff] }
 0x128   : > { %v916_v1 = vadd.f32 %v884_v2, %v784_v57  ;;  %v1084_v8 = vmul.f32 %v3145_v27, %v2772_v9  ;;  %v1215_v63 = vadd.f32 %v1183_v25, %v1115_v13  ;;  %v1384_v14 = vmul.f32 %v2780_v21, %v3171_v54 }
 0x129   : > { %2467 = vmatmul.mubr.msk.f32.gmra.mxu1 %vm641_vm1, %v1716_v60  ;;  %v1515_v11 = vadd.f32 %v1483_v50, %v1415_v62  ;;  %v1484_v61 = vmul.f32 %v2778_v16, %v3173_v32  ;;  %v1685_v33 = vmax.f32 %v1653_v4, 0.0  ;;  %v1584_v18 = vmul.f32 %v2782_v22, %v3181_v15 }
 0x12a   : > { %v1016_v45 = vadd.f32 %v984_v56, %v916_v1  ;;  %v785_v39 = vmul.f32 %v3112_v35, %v2743_v42  ;;  %v1315_v7 = vadd.f32 %v1283_v41, %v1215_v63  ;;  %v1184_v0 = vmul.f32 %v3147_v38, %v2767_v5 }
 0x12b   : > { %v1615_v46 = vadd.f32 %v1583_v59, %v1515_v11  ;;  %v885_v19 = vmul.f32 %v3121_v3, %v2745_v43  ;;  %v1717_v23 = vmin.f32 %v1685_v33, 6.0  ;;  %v1284_v26 = vmul.f32 %v3149_v20, %v2774_v10 }
 0x12c   : > { %v1116_v24 = vadd.f32 %v1084_v8, %v1016_v45  ;;  %v985_v35 = vmul.f32 %v3123_v58, %v2752_v55  ;;  %v1416_v53 = vadd.f32 %v1384_v14, %v1315_v7  ;;  %v1085_v28 = vmul.f32 %v3171_v54, %v2772_v9  ;;  %v3222_v58 = vld [vmem:[#allocation2 + $0xf0] sm:$0xff]  ;;  %v3248_v14 = vld [vmem:[#allocation2 + $0xf8] sm:$0xff] }
 0x12d   : > { %v1654_v36 = vadd.f32 %v2841_v31, %v1615_v46  ;;  %v917_v51 = vadd.f32 %v885_v19, %v785_v39  ;;  %2469 = vmatprep.mubr.msk.f32.mxu1 %vm641_vm1, %v1717_v23  ;;  %v1385_v3 = vmul.f32 %v2780_v21, %v3200_v6  ;;  %v1485_v49 = vmul.f32 %v2778_v16, %v3202_v12  ;;  %v3256_v39 = vld [vmem:[#allocation2 + $0xf9] sm:$0xff] }
 0x12e   : > { %v1216_v40 = vadd.f32 %v1184_v0, %v1116_v24  ;;  %v1585_v52 = vmul.f32 %v2782_v22, %v3204_v17  ;;  %v1516_v29 = vadd.f32 %v1484_v61, %v1416_v53  ;;  %v786_v59 = vmul.f32 %v3145_v27, %v2743_v42  ;;  %v3260_v19 = vld [vmem:[#allocation2 + $0xfa] sm:$0xff] }
 0x12f   : > { %v1686_v48 = vmax.f32 %v1654_v36, 0.0  ;;  %v1017_v50 = vadd.f32 %v985_v35, %v917_v51  ;;  %v1185_v34 = vmul.f32 %v3173_v32, %v2767_v5  ;;  %v1285_v47 = vmul.f32 %v3181_v15, %v2774_v10 }
 0x130   : > { %v1316_v30 = vadd.f32 %v1284_v26, %v1216_v40  ;;  %v886_v25 = vmul.f32 %v3147_v38, %v2745_v43  ;;  %v1616_v2 = vadd.f32 %v1584_v18, %v1516_v29  ;;  %v1386_v27 = vmul.f32 %v2780_v21, %v3222_v58 }
 0x131   : > { %v1718_v57 = vmin.f32 %v1686_v48, 6.0  ;;  %v1117_v60 = vadd.f32 %v1085_v28, %v1017_v50  ;;  %v986_v41 = vmul.f32 %v3149_v20, %v2752_v55  ;;  %v1086_v4 = vmul.f32 %v3200_v6, %v2772_v9 }
 0x132   : > { %v1417_v62 = vadd.f32 %v1385_v3, %v1316_v30  ;;  %v918_v13 = vadd.f32 %v886_v25, %v786_v59  ;;  %v1655_v1 = vadd.f32 %v2841_v31, %v1616_v2  ;;  %v1486_v38 = vmul.f32 %v2778_v16, %v3230_v37  ;;  %v3280_v59 = vld [vmem:[#allocation2 + $0x108] sm:$0xff] }
 0x133   : > { %2470 = vmatmul.mubr.msk.f32.gmra.mxu1 %vm641_vm1, %v1718_v57  ;;  %v1217_v56 = vadd.f32 %v1185_v34, %v1117_v60  ;;  %v1586_v8 = vmul.f32 %v2782_v22, %v3232_v44  ;;  %v787_v20 = vmul.f32 %v3171_v54, %v2743_v42  ;;  %v887_v61 = vmul.f32 %v3173_v32, %v2745_v43  ;;  %v3282_v30 = vld [vmem:[#allocation2 + $0x109] sm:$0xff] }
 0x134   : > { %v1517_v11 = vadd.f32 %v1485_v49, %v1417_v62  ;;  %v1018_v63 = vadd.f32 %v986_v41, %v918_v13  ;;  %v1687_v33 = vmax.f32 %v1655_v1, 0.0  ;;  %v1186_v45 = vmul.f32 %v3202_v12, %v2767_v5 }
 0x135   : > { %v1317_v18 = vadd.f32 %v1285_v47, %v1217_v56  ;;  %v987_v46 = vmul.f32 %v3181_v15, %v2752_v55  ;;  %v919_v23 = vadd.f32 %v887_v61, %v787_v20  ;;  %v1087_v54 = vmul.f32 %v3222_v58, %v2772_v9  ;;  %v3284_v47 = vld [vmem:[#allocation2 + $0x10a] sm:$0xff] }
 0x136   : > { %v1617_v7 = vadd.f32 %v1585_v52, %v1517_v11  ;;  %v1118_v0 = vadd.f32 %v1086_v4, %v1018_v63  ;;  %v1719_v24 = vmin.f32 %v1687_v33, 6.0  ;;  %v1286_v26 = vmul.f32 %v3204_v17, %v2774_v10  ;;  %v3304_v20 = vld [vmem:[#allocation2 + $0x110] sm:$0xff] }
 0x137   : > { %v1418_v32 = vadd.f32 %v1386_v27, %v1317_v18  ;;  %v1387_v35 = vmul.f32 %v2780_v21, %v3248_v14  ;;  %v1487_v15 = vmul.f32 %v2778_v16, %v3256_v39  ;;  %v1019_v51 = vadd.f32 %v987_v46, %v919_v23  ;;  %v3306_v61 = vld [vmem:[#allocation2 + $0x111] sm:$0xff] }
 0x138   : > { %v1656_v36 = vadd.f32 %v2841_v31, %v1617_v7  ;;  %v1218_v53 = vadd.f32 %v1186_v45, %v1118_v0  ;;  %2472 = vmatprep.mubr.msk.f32.mxu1 %vm641_vm1, %v1719_v24  ;;  %v1587_v40 = vmul.f32 %v2782_v22, %v3260_v19  ;;  %v788_v3 = vmul.f32 %v3200_v6, %v2743_v42  ;;  %v3312_v7 = vld [vmem:[#allocation2 + $0x112] sm:$0xff] }
 0x139   : > { %v1518_v28 = vadd.f32 %v1486_v38, %v1418_v32  ;;  %v888_v49 = vmul.f32 %v3202_v12, %v2745_v43  ;;  %v1119_v29 = vadd.f32 %v1087_v54, %v1019_v51  ;;  %v1187_v50 = vmul.f32 %v3230_v37, %v2767_v5 }
 0x13a   : > { %v1688_v52 = vmax.f32 %v1656_v36, 0.0  ;;  %v1318_v48 = vadd.f32 %v1286_v26, %v1218_v53  ;;  %v988_v6 = vmul.f32 %v3204_v17, %v2752_v55  ;;  %v1088_v12 = vmul.f32 %v3248_v14, %v2772_v9 }
 0x13b   : > { %v1618_v34 = vadd.f32 %v1586_v8, %v1518_v28  ;;  %v920_v25 = vadd.f32 %v888_v49, %v788_v3  ;;  %v1219_v60 = vadd.f32 %v1187_v50, %v1119_v29  ;;  %v1287_v27 = vmul.f32 %v3232_v44, %v2774_v10  ;;  %v3330_v3 = vld [vmem:[#allocation2 + $0x120] sm:$0xff] }
 0x13c   : > { %v1720_v57 = vmin.f32 %v1688_v52, 6.0  ;;  %v1419_v2 = vadd.f32 %v1387_v35, %v1318_v48  ;;  %v1388_v13 = vmul.f32 %v2780_v21, %v3280_v59  ;;  %v1488_v41 = vmul.f32 %v2778_v16, %v3282_v30  ;;  %v3332_v49 = vld [vmem:[#allocation2 + $0x121] sm:$0xff] }
 0x13d   : > { %v1657_v62 = vadd.f32 %v2841_v31, %v1618_v34  ;;  %v1020_v4 = vadd.f32 %v988_v6, %v920_v25  ;;  %v1319_v1 = vadd.f32 %v1287_v27, %v1219_v60  ;;  %v1588_v56 = vmul.f32 %v2782_v22, %v3284_v47  ;;  %v3338_v34 = vld [vmem:[#allocation2 + $0x122] sm:$0xff] }
 0x13e   : > { %2473 = vmatmul.mubr.msk.f32.gmra.mxu1 %vm641_vm1, %v1720_v57  ;;  %v1519_v17 = vadd.f32 %v1487_v15, %v1419_v2  ;;  %v789_v38 = vmul.f32 %v3222_v58, %v2743_v42  ;;  %v1188_v63 = vmul.f32 %v3256_v39, %v2767_v5  ;;  %v889_v33 = vmul.f32 %v3230_v37, %v2745_v43 }
 0x13f   : > { %v1689_v8 = vmax.f32 %v1657_v62, 0.0  ;;  %v1120_v11 = vadd.f32 %v1088_v12, %v1020_v4  ;;  %v1420_v45 = vadd.f32 %v1388_v13, %v1319_v1  ;;  %v1288_v46 = vmul.f32 %v3260_v19, %v2774_v10 }
 0x140   : > { %v1619_v18 = vadd.f32 %v1587_v40, %v1519_v17  ;;  %v989_v58 = vmul.f32 %v3232_v44, %v2752_v55  ;;  %v921_v54 = vadd.f32 %v889_v33, %v789_v38  ;;  %v1089_v24 = vmul.f32 %v3280_v59, %v2772_v9  ;;  %v3358_v38 = vld [vmem:[#allocation2 + $0x129] sm:$0xff] }
 0x141   : > { %v1721_v0 = vmin.f32 %v1689_v8, 6.0  ;;  %v1220_v23 = vadd.f32 %v1188_v63, %v1120_v11  ;;  %v1520_v26 = vadd.f32 %v1488_v41, %v1420_v45  ;;  %v1389_v37 = vmul.f32 %v2780_v21, %v3304_v20  ;;  %v3360_v8 = vld [vmem:[#allocation2 + $0x12a] sm:$0xff] }
 0x142   : > { %v1658_v32 = vadd.f32 %v2841_v31, %v1619_v18  ;;  %v1489_v35 = vmul.f32 %v2778_v16, %v3306_v61  ;;  %v1589_v44 = vmul.f32 %v2782_v22, %v3312_v7  ;;  %v1021_v53 = vadd.f32 %v989_v58, %v921_v54 }
 0x143   : > { %2475 = vmatprep.mubr.msk.f32.mxu1 %vm641_vm1, %v1721_v0  ;;  %v1320_v36 = vadd.f32 %v1288_v46, %v1220_v23  ;;  %v790_v15 = vmul.f32 %v3248_v14, %v2743_v42  ;;  %v1620_v28 = vadd.f32 %v1588_v56, %v1520_v26  ;;  %v1189_v40 = vmul.f32 %v3282_v30, %v2767_v5  ;;  %v3356_v56 = vld [vmem:[#allocation2 + $0x128] sm:$0xff] }
 0x144   : > { %v1690_v51 = vmax.f32 %v1658_v32, 0.0  ;;  %v890_v52 = vmul.f32 %v3256_v39, %v2745_v43  ;;  %v1121_v29 = vadd.f32 %v1089_v24, %v1021_v53  ;;  %v1289_v50 = vmul.f32 %v3284_v47, %v2774_v10  ;;  %v3386_v53 = vld [vmem:[#allocation2 + $0x139] sm:$0xff] }
 0x145   : > { %v1421_v48 = vadd.f32 %v1389_v37, %v1320_v36  ;;  %v990_v14 = vmul.f32 %v3260_v19, %v2752_v55  ;;  %v1659_v6 = vadd.f32 %v2841_v31, %v1620_v28  ;;  %v1090_v57 = vmul.f32 %v3304_v20, %v2772_v9 }
 0x146   : > { %v1722_v25 = vmin.f32 %v1690_v51, 6.0  ;;  %v922_v12 = vadd.f32 %v890_v52, %v790_v15  ;;  %v1221_v60 = vadd.f32 %v1189_v40, %v1121_v29  ;;  %v1390_v39 = vmul.f32 %v2780_v21, %v3330_v3  ;;  %v3388_v15 = vld [vmem:[#allocation2 + $0x13a] sm:$0xff] }
 0x147   : > { %v1521_v2 = vadd.f32 %v1489_v35, %v1421_v48  ;;  %v1490_v27 = vmul.f32 %v2778_v16, %v3332_v49  ;;  %v1691_v62 = vmax.f32 %v1659_v6, 0.0  ;;  %v1590_v19 = vmul.f32 %v2782_v22, %v3338_v34 }
 0x148   : > { %2476 = vmatmul.mubr.msk.f32.gmra.mxu1 %vm641_vm1, %v1722_v25  ;;  %v1022_v13 = vadd.f32 %v990_v14, %v922_v12  ;;  %v791_v41 = vmul.f32 %v3280_v59, %v2743_v42  ;;  %v1321_v17 = vadd.f32 %v1289_v50, %v1221_v60  ;;  %v1190_v1 = vmul.f32 %v3306_v61, %v2767_v5  ;;  %v3409_v60 = vld [vmem:[#allocation2 + $0x140] sm:$0xff] }
 0x149   : > { %v1621_v4 = vadd.f32 %v1589_v44, %v1521_v2  ;;  %v891_v11 = vmul.f32 %v3282_v30, %v2745_v43  ;;  %v1723_v63 = vmin.f32 %v1691_v62, 6.0  ;;  %v1290_v18 = vmul.f32 %v3312_v7, %v2774_v10 }
 0x14a   : > { %v1122_v33 = vadd.f32 %v1090_v57, %v1022_v13  ;;  %v991_v59 = vmul.f32 %v3284_v47, %v2752_v55  ;;  %v1422_v46 = vadd.f32 %v1390_v39, %v1321_v17  ;;  %v1091_v0 = vmul.f32 %v3330_v3, %v2772_v9  ;;  %v3378_v47 = vld [vmem:[#allocation2 + $0x138] sm:$0xff] }
 0x14b   : > { %v1660_v45 = vadd.f32 %v2841_v31, %v1621_v4  ;;  %v923_v58 = vadd.f32 %v891_v11, %v791_v41  ;;  %2478 = vmatprep.mubr.msk.f32.mxu1 %vm641_vm1, %v1723_v63  ;;  %v1391_v30 = vmul.f32 %v2780_v21, %v3356_v56  ;;  %v1491_v54 = vmul.f32 %v2778_v16, %v3358_v38  ;;  %v3417_v41 = vld [vmem:[#allocation2 + $0x141] sm:$0xff] }
 0x14c   : > { %v1222_v23 = vadd.f32 %v1190_v1, %v1122_v33  ;;  %v1591_v24 = vmul.f32 %v2782_v22, %v3360_v8  ;;  %v1522_v32 = vadd.f32 %v1490_v27, %v1422_v46  ;;  %v792_v37 = vmul.f32 %v3304_v20, %v2743_v42  ;;  %v3421_v11 = vld [vmem:[#allocation2 + $0x142] sm:$0xff] }
 0x14d   : > { %v1692_v31 = vmax.f32 %v1660_v45, 0.0  ;;  %v1023_v26 = vadd.f32 %v991_v59, %v923_v58  ;;  %v1191_v36 = vmul.f32 %v3332_v49, %v2767_v5  ;;  %v1291_v44 = vmul.f32 %v3338_v34, %v2774_v10 }
 0x14e   : > { %v1322_v35 = vadd.f32 %v1290_v18, %v1222_v23  ;;  %v892_v51 = vmul.f32 %v3306_v61, %v2745_v43  ;;  %v1622_v40 = vadd.f32 %v1590_v19, %v1522_v32  ;;  %v1392_v20 = vmul.f32 %v2780_v21, %v3378_v47  ;;  %v3402_v61 = vld [vmem:[%s3745_s4] ss:$0 sm:$0xff] }
 0x14f   : > { %v1724_v28 = vmin.f32 %v1692_v31, 6.0  ;;  %v1123_v52 = vadd.f32 %v1091_v0, %v1023_v26  ;;  %v992_v50 = vmul.f32 %v3312_v7, %v2752_v55  ;;  %v1092_v14 = vmul.f32 %v3356_v56, %v2772_v9 }
 0x150   : > { %v1423_v48 = vadd.f32 %v1391_v30, %v1322_v35  ;;  %v924_v29 = vadd.f32 %v892_v51, %v792_v37  ;;  %v1661_v25 = vadd.f32 %v3402_v61, %v1622_v40  ;;  %v1492_v12 = vmul.f32 %v2778_v16, %v3386_v53  ;;  %v3441_v37 = vld [vmem:[#allocation2 + $0x150] sm:$0xff] }
 0x151   : > { %2479 = vmatmul.mubr.msk.f32.gmra.mxu1 %vm641_vm1, %v1724_v28  ;;  %v1223_v6 = vadd.f32 %v1191_v36, %v1123_v52  ;;  %v1592_v57 = vmul.f32 %v2782_v22, %v3388_v15  ;;  %v793_v39 = vmul.f32 %v3330_v3, %v2743_v42  ;;  %v893_v27 = vmul.f32 %v3332_v49, %v2745_v43  ;;  %v3443_v35 = vld [vmem:[#allocation2 + $0x151] sm:$0xff] }
 0x152   : > { %v1523_v7 = vadd.f32 %v1491_v54, %v1423_v48  ;;  %v1024_v2 = vadd.f32 %v992_v50, %v924_v29  ;;  %v1693_v62 = vmax.f32 %v1661_v25, 0.0  ;;  %v1192_v13 = vmul.f32 %v3358_v38, %v2767_v5 }
 0x153   : > { %v1323_v19 = vadd.f32 %v1291_v44, %v1223_v6  ;;  %v993_v4 = vmul.f32 %v3338_v34, %v2752_v55  ;;  %v925_v63 = vadd.f32 %v893_v27, %v793_v39  ;;  %v1093_v3 = vmul.f32 %v3378_v47, %v2772_v9  ;;  %v3445_v44 = vld [vmem:[#allocation2 + $0x152] sm:$0xff] }
 0x154   : > { %v1623_v17 = vadd.f32 %v1591_v24, %v1523_v7  ;;  %v1124_v1 = vadd.f32 %v1092_v14, %v1024_v2  ;;  %v1725_v33 = vmin.f32 %v1693_v62, 6.0  ;;  %v1292_v18 = vmul.f32 %v3360_v8, %v2774_v10  ;;  %v3465_v39 = vld [vmem:[#allocation2 + $0x158] sm:$0xff] }
 0x155   : > { %v1424_v49 = vadd.f32 %v1392_v20, %v1323_v19  ;;  %v1393_v59 = vmul.f32 %v2780_v21, %v3409_v60  ;;  %v1493_v34 = vmul.f32 %v2778_v16, %v3417_v41  ;;  %v1025_v58 = vadd.f32 %v993_v4, %v925_v63  ;;  %v3467_v27 = vld [vmem:[#allocation2 + $0x159] sm:$0xff] }
 0x156   : > { %v1662_v45 = vadd.f32 %v3402_v61, %v1623_v17  ;;  %v1224_v46 = vadd.f32 %v1192_v13, %v1124_v1  ;;  %2481 = vmatprep.mubr.msk.f32.mxu1 %vm641_vm1, %v1725_v33  ;;  %v1593_v23 = vmul.f32 %v2782_v22, %v3421_v11  ;;  %v794_v30 = vmul.f32 %v3356_v56, %v2743_v42  ;;  %v3473_v17 = vld [vmem:[#allocation2 + $0x15a] sm:$0xff] }
 0x157   : > { %v1524_v0 = vadd.f32 %v1492_v12, %v1424_v49  ;;  %v894_v54 = vmul.f32 %v3358_v38, %v2745_v43  ;;  %v1125_v32 = vadd.f32 %v1093_v3, %v1025_v58  ;;  %v1193_v26 = vmul.f32 %v3386_v53, %v2767_v5 }
 0x158   : > { %v1694_v24 = vmax.f32 %v1662_v45, 0.0  ;;  %v1324_v31 = vadd.f32 %v1292_v18, %v1224_v46  ;;  %v994_v56 = vmul.f32 %v3360_v8, %v2752_v55  ;;  %v1094_v38 = vmul.f32 %v3409_v60, %v2772_v9 }
 0x159   : > { %v1624_v36 = vadd.f32 %v1592_v57, %v1524_v0  ;;  %v926_v51 = vadd.f32 %v894_v54, %v794_v30  ;;  %v1225_v52 = vadd.f32 %v1193_v26, %v1125_v32  ;;  %v1293_v20 = vmul.f32 %v3388_v15, %v2774_v10  ;;  %v3491_v30 = vld [vmem:[#allocation2 + $0x168] sm:$0xff] }
 0x15a   : > { %v1726_v28 = vmin.f32 %v1694_v24, 6.0  ;;  %v1425_v40 = vadd.f32 %v1393_v59, %v1324_v31  ;;  %v1394_v29 = vmul.f32 %v2780_v21, %v3441_v37  ;;  %v1494_v50 = vmul.f32 %v2778_v16, %v3443_v35  ;;  %v3493_v54 = vld [vmem:[#allocation2 + $0x169] sm:$0xff] }
 0x15b   : > { %v1663_v48 = vadd.f32 %v3402_v61, %v1624_v36  ;;  %v1026_v14 = vadd.f32 %v994_v56, %v926_v51  ;;  %v1325_v25 = vadd.f32 %v1293_v20, %v1225_v52  ;;  %v1594_v6 = vmul.f32 %v2782_v22, %v3445_v44  ;;  %v3499_v36 = vld [vmem:[#allocation2 + $0x16a] sm:$0xff] }
 0x15c   : > { %2482 = vmatmul.mubr.msk.f32.gmra.mxu1 %vm641_vm1, %v1726_v28  ;;  %v1525_v8 = vadd.f32 %v1493_v34, %v1425_v40  ;;  %v795_v12 = vmul.f32 %v3378_v47, %v2743_v42  ;;  %v1194_v2 = vmul.f32 %v3417_v41, %v2767_v5  ;;  %v895_v62 = vmul.f32 %v3386_v53, %v2745_v43 }
 0x15d   : > { %v1695_v57 = vmax.f32 %v1663_v48, 0.0  ;;  %v1126_v7 = vadd.f32 %v1094_v38, %v1026_v14  ;;  %v1426_v13 = vadd.f32 %v1394_v29, %v1325_v25  ;;  %v1294_v4 = vmul.f32 %v3421_v11, %v2774_v10 }
 0x15e   : > { %v1625_v19 = vadd.f32 %v1593_v23, %v1525_v8  ;;  %v995_v47 = vmul.f32 %v3388_v15, %v2752_v55  ;;  %v927_v3 = vadd.f32 %v895_v62, %v795_v12  ;;  %v1095_v33 = vmul.f32 %v3441_v37, %v2772_v9  ;;  %v3519_v12 = vld [vmem:[#allocation2 + $0x171] sm:$0xff] }
 0x15f   : > { %v1727_v1 = vmin.f32 %v1695_v57, 6.0  ;;  %v1226_v63 = vadd.f32 %v1194_v2, %v1126_v7  ;;  %v1526_v18 = vadd.f32 %v1494_v50, %v1426_v13  ;;  %v1395_v53 = vmul.f32 %v2780_v21, %v3465_v39  ;;  %v3521_v57 = vld [vmem:[#allocation2 + $0x172] sm:$0xff] }
 0x160   : > { %v1664_v49 = vadd.f32 %v3402_v61, %v1625_v19  ;;  %v1495_v59 = vmul.f32 %v2778_v16, %v3467_v27  ;;  %v1595_v15 = vmul.f32 %v2782_v22, %v3473_v17  ;;  %v1027_v46 = vadd.f32 %v995_v47, %v927_v3 }
 0x161   : > { %2484 = vmatprep.mubr.msk.f32.mxu1 %vm641_vm1, %v1727_v1  ;;  %v1326_v45 = vadd.f32 %v1294_v4, %v1226_v63  ;;  %v796_v34 = vmul.f32 %v3409_v60, %v2743_v42  ;;  %v1626_v0 = vadd.f32 %v1594_v6, %v1526_v18  ;;  %v1195_v23 = vmul.f32 %v3443_v35, %v2767_v5  ;;  %v3517_v6 = vld [vmem:[#allocation2 + $0x170] sm:$0xff] }
 0x162   : > { %v1696_v58 = vmax.f32 %v1664_v49, 0.0  ;;  %v896_v24 = vmul.f32 %v3417_v41, %v2745_v43  ;;  %v1127_v32 = vadd.f32 %v1095_v33, %v1027_v46  ;;  %v1295_v26 = vmul.f32 %v3445_v44, %v2774_v10 }
 0x163   : > { %v1427_v31 = vadd.f32 %v1395_v53, %v1326_v45  ;;  %v996_v60 = vmul.f32 %v3421_v11, %v2752_v55  ;;  %v1665_v56 = vadd.f32 %v3402_v61, %v1626_v0  ;;  %v1096_v28 = vmul.f32 %v3465_v39, %v2772_v9 }
 0x164   : > { %v1728_v51 = vmin.f32 %v1696_v58, 6.0  ;;  %v928_v38 = vadd.f32 %v896_v24, %v796_v34  ;;  %v1227_v52 = vadd.f32 %v1195_v23, %v1127_v32  ;;  %v1396_v41 = vmul.f32 %v2780_v21, %v3491_v30  ;;  %v1462_v34 = vld [vmem:[#allocation2 + $0x181] sm:$0xff] }
 0x165   : > { %v1527_v40 = vadd.f32 %v1495_v59, %v1427_v31  ;;  %v1496_v20 = vmul.f32 %v2778_v16, %v3493_v54  ;;  %v1697_v48 = vmax.f32 %v1665_v56, 0.0  ;;  %v1596_v11 = vmul.f32 %v2782_v22, %v3499_v36  ;;  %v1562_v58 = vld [vmem:[#allocation2 + $0x182] sm:$0xff] }
 0x166   : > { %2485 = vmatmul.mubr.msk.f32.gmra.mxu1 %vm641_vm1, %v1728_v51  ;;  %v1028_v29 = vadd.f32 %v996_v60, %v928_v38  ;;  %v797_v50 = vmul.f32 %v3441_v37, %v2743_v42  ;;  %v1327_v8 = vadd.f32 %v1295_v26, %v1227_v52  ;;  %v1196_v25 = vmul.f32 %v3467_v27, %v2767_v5 }
 0x167   : > { %v1627_v14 = vadd.f32 %v1595_v15, %v1527_v40  ;;  %v897_v7 = vmul.f32 %v3443_v35, %v2745_v43  ;;  %v1729_v2 = vmin.f32 %v1697_v48, 6.0  ;;  %v1296_v19 = vmul.f32 %v3473_v17, %v2774_v10 }
 0x168   : > { %v1128_v62 = vadd.f32 %v1096_v28, %v1028_v29  ;;  %v997_v37 = vmul.f32 %v3445_v44, %v2752_v55  ;;  %v1428_v4 = vadd.f32 %v1396_v41, %v1327_v8  ;;  %v1097_v1 = vmul.f32 %v3491_v30, %v2772_v9  ;;  %v1362_v44 = vld [vmem:[#allocation2 + $0x180] sm:$0xff]  ;;  %v1363_v41 = vld [vmem:[#allocation2 + $0x188] sm:$0xff] }
 0x169   : > { %v1666_v13 = vadd.f32 %v3402_v61, %v1627_v14  ;;  %v929_v47 = vadd.f32 %v897_v7, %v797_v50  ;;  %2487 = vmatprep.mubr.msk.f32.mxu1 %vm641_vm1, %v1729_v2  ;;  %v1397_v35 = vmul.f32 %v2780_v21, %v3517_v6  ;;  %v1497_v3 = vmul.f32 %v2778_v16, %v3519_v12  ;;  %v1463_v50 = vld [vmem:[#allocation2 + $0x189] sm:$0xff] }
 0x16a   : > { %v1228_v63 = vadd.f32 %v1196_v25, %v1128_v62  ;;  %v1597_v33 = vmul.f32 %v2782_v22, %v3521_v57  ;;  %v1528_v18 = vadd.f32 %v1496_v20, %v1428_v4  ;;  %v798_v59 = vmul.f32 %v3465_v39, %v2743_v42 }
 0x16b   : > { %v1698_v49 = vmax.f32 %v1666_v13, 0.0  ;;  %v1029_v53 = vadd.f32 %v997_v37, %v929_v47  ;;  %v1197_v15 = vmul.f32 %v3493_v54, %v2767_v5  ;;  %v1297_v46 = vmul.f32 %v3499_v36, %v2774_v10 }
 0x16c   : > { %v1328_v45 = vadd.f32 %v1296_v19, %v1228_v63  ;;  %v898_v0 = vmul.f32 %v3467_v27, %v2745_v43  ;;  %v1628_v24 = vadd.f32 %v1596_v11, %v1528_v18  ;;  %v1398_v32 = vmul.f32 %v2780_v21, %v1362_v44  ;;  %v1364_v63 = vld [vmem:[#allocation2 + $0x198] sm:$0xff] }
 0x16d   : > { %v1730_v23 = vmin.f32 %v1698_v49, 6.0  ;;  %v1129_v31 = vadd.f32 %v1097_v1, %v1029_v53  ;;  %v998_v39 = vmul.f32 %v3473_v17, %v2752_v55  ;;  %v1098_v51 = vmul.f32 %v3517_v6, %v2772_v9 }
 0x16e   : > { %v1429_v26 = vadd.f32 %v1397_v35, %v1328_v45  ;;  %v930_v60 = vadd.f32 %v898_v0, %v798_v59  ;;  %v1667_v56 = vadd.f32 %v3402_v61, %v1628_v24  ;;  %v1498_v27 = vmul.f32 %v2778_v16, %v1462_v34  ;;  %v1563_v59 = vld [vmem:[#allocation2 + $0x18a] sm:$0xff]  ;;  %v1464_v45 = vld [vmem:[#allocation2 + $0x199] sm:$0xff] }
 0x16f   : > { %2488 = vmatmul.mubr.msk.f32.gmra.mxu1 %vm641_vm1, %v1730_v23  ;;  %v1229_v38 = vadd.f32 %v1197_v15, %v1129_v31  ;;  %v1598_v28 = vmul.f32 %v2782_v22, %v1562_v58  ;;  %v799_v20 = vmul.f32 %v3491_v30, %v2743_v42  ;;  %v899_v17 = vmul.f32 %v3493_v54, %v2745_v43 }
 0x170   : > { %v1529_v40 = vadd.f32 %v1497_v3, %v1429_v26  ;;  %v1030_v52 = vadd.f32 %v998_v39, %v930_v60  ;;  %v1699_v48 = vmax.f32 %v1667_v56, 0.0  ;;  %v1198_v29 = vmul.f32 %v3519_v12, %v2767_v5 }
 0x171   : > { %v1329_v11 = vadd.f32 %v1297_v46, %v1229_v38  ;;  %v999_v14 = vmul.f32 %v3499_v36, %v2752_v55  ;;  %v931_v7 = vadd.f32 %v899_v17, %v799_v20  ;;  %v1099_v2 = vmul.f32 %v1362_v44, %v2772_v9  ;;  %v1465_v38 = vld [vmem:[#allocation2 + $0x1a1] sm:$0xff] }
 0x172   : > { %v1629_v8 = vadd.f32 %v1597_v33, %v1529_v40  ;;  %v1130_v25 = vadd.f32 %v1098_v51, %v1030_v52  ;;  %v1731_v62 = vmin.f32 %v1699_v48, 6.0  ;;  %v1298_v30 = vmul.f32 %v3521_v57, %v2774_v10  ;;  %v1565_v17 = vld [vmem:[#allocation2 + $0x1a2] sm:$0xff] }
 0x173   : > { %v1430_v19 = vadd.f32 %v1398_v32, %v1329_v11  ;;  %v1399_v54 = vmul.f32 %v2780_v21, %v1363_v41  ;;  %v1499_v4 = vmul.f32 %v2778_v16, %v1463_v50  ;;  %v1031_v47 = vadd.f32 %v999_v14, %v931_v7 }
 0x174   : > { %v1668_v37 = vadd.f32 %v3402_v61, %v1629_v8  ;;  %v1230_v13 = vadd.f32 %v1198_v29, %v1130_v25  ;;  %2490 = vmatprep.mubr.msk.f32.mxu1 %vm641_vm1, %v1731_v62  ;;  %v1199_v1 = vmul.f32 %v1462_v34, %v2767_v5  ;;  %v800_v35 = vmul.f32 %v3517_v6, %v2743_v42 }
 0x175   : > { %v1530_v36 = vadd.f32 %v1498_v27, %v1430_v19  ;;  %v900_v3 = vmul.f32 %v3519_v12, %v2745_v43  ;;  %v1131_v49 = vadd.f32 %v1099_v2, %v1031_v47  ;;  %v1299_v18 = vmul.f32 %v1562_v58, %v2774_v10  ;;  %v1564_v12 = vld [vmem:[#allocation2 + $0x19a] sm:$0xff] }
 0x176   : > { %v1700_v33 = vmax.f32 %v1668_v37, 0.0  ;;  %v1330_v44 = vadd.f32 %v1298_v30, %v1230_v13  ;;  %v1000_v46 = vmul.f32 %v3521_v57, %v2752_v55  ;;  %v1100_v34 = vmul.f32 %v1363_v41, %v2772_v9  ;;  %v1365_v55 = vld [vmem:[#allocation2 + $0x1a0] sm:$0xff] }
 0x177   : > { %v1630_v53 = vadd.f32 %v1598_v28, %v1530_v36  ;;  %v932_v15 = vadd.f32 %v900_v3, %v800_v35  ;;  %v1231_v42 = vadd.f32 %v1199_v1, %v1131_v49  ;;  %v1400_v6 = vmul.f32 %v2780_v21, %v1364_v63  ;;  %v2509_v36 = vld [vmem:[%s2609_s8 + $0x8] sm:$0xff]  ;;  %v2510_v3 = vld [vmem:[%s2609_s8] sm:$0xff] }
 0x178   : > { %v1732_v0 = vmin.f32 %v1700_v33, 6.0  ;;  %v1431_v23 = vadd.f32 %v1399_v54, %v1330_v44  ;;  %v1599_v31 = vmul.f32 %v2782_v22, %v1563_v59  ;;  %v1500_v26 = vmul.f32 %v2778_v16, %v1464_v45 }
 0x179   : > { %v1669_v43 = vadd.f32 %v3402_v61, %v1630_v53  ;;  %v1032_v24 = vadd.f32 %v1000_v46, %v932_v15  ;;  %v1331_v32 = vadd.f32 %v1299_v18, %v1231_v42  ;;  %v1200_v60 = vmul.f32 %v1463_v50, %v2767_v5  ;;  %v2511_v15 = vld [vmem:[%s2609_s8 + $0x18] sm:$0xff] }
 0x17a   : > { %2491 = vmatmul.mubr.msk.f32.gmra.mxu1 %vm641_vm1, %v1732_v0  ;;  %v1531_v58 = vadd.f32 %v1499_v4, %v1431_v23  ;;  %v1600_v56 = vmul.f32 %v2782_v22, %v1564_v12  ;;  %v1300_v40 = vmul.f32 %v1563_v59, %v2774_v10  ;;  %v1401_v52 = vmul.f32 %v2780_v21, %v1365_v55  ;;  %v2512_v0 = vld [vmem:[%s2609_s8 + $0x10] sm:$0xff] }
 0x17b   : > { %v1701_v57 = vmax.f32 %v1669_v43, 0.0  ;;  %v1132_v9 = vadd.f32 %v1100_v34, %v1032_v24  ;;  %v1432_v51 = vadd.f32 %v1400_v6, %v1331_v32  ;;  %v1501_v5 = vmul.f32 %v2778_v16, %v1465_v38  ;;  %v2513_v32 = vld [vmem:[%s2609_s8 + $0x28] sm:$0xff] }
 0x17c   : > { %v1631_v39 = vadd.f32 %v1599_v31, %v1531_v58  ;;  %v1601_v14 = vmul.f32 %v2782_v22, %v1565_v17  ;;  %v3601_v22 = vld [vmem:[%s3747_s6] ss:$0 sm:$0xff] }
 0x17d   : > { %v1733_v27 = vmin.f32 %v1701_v57, 6.0  ;;  %v1232_v28 = vadd.f32 %v1200_v60, %v1132_v9  ;;  %v1532_v20 = vadd.f32 %v1500_v26, %v1432_v51  ;;  %v2514_v57 = vld [vmem:[%s2609_s8 + $0x20] sm:$0xff] }
 0x17e   : > { %v1670_v41 = vadd.f32 %v3402_v61, %v1631_v39 }
 0x17f   : > { %2493 = vmatprep.mubr.msk.f32.mxu1 %vm641_vm1, %v1733_v27  ;;  %v1332_v48 = vadd.f32 %v1300_v40, %v1232_v28  ;;  %v1632_v29 = vadd.f32 %v1600_v56, %v1532_v20  ;;  %v2515_v40 = vld [vmem:[%s2609_s8 + $0x38] sm:$0xff]  ;;  %v2516_v20 = vld [vmem:[%s2609_s8 + $0x30] sm:$0xff] }
 0x180   : > { %v1702_v11 = vmax.f32 %v1670_v41, 0.0 }
 0x181   : > { %v1433_v50 = vadd.f32 %v1401_v52, %v1332_v48  ;;  %v1671_v25 = vadd.f32 %v3402_v61, %v1632_v29 }
 0x182   : > { %v1734_v8 = vmin.f32 %v1702_v11, 6.0 }
 0x183   : > { %v1533_v10 = vadd.f32 %v1501_v5, %v1433_v50  ;;  %v1703_v21 = vmax.f32 %v1671_v25, 0.0  ;;  %v2517_v25 = vld [vmem:[%s2609_s8 + $0x48] sm:$0xff] }
 0x184   : > { %2494 = vmatmul.mubr.msk.f32.gmra.mxu1 %vm641_vm1, %v1734_v8 }
 0x185   : > { %v1633_v7 = vadd.f32 %v1601_v14, %v1533_v10  ;;  %v1735_v2 = vmin.f32 %v1703_v21, 6.0 }
 0x187   : > { %v1672_v62 = vadd.f32 %v3402_v61, %v1633_v7  ;;  %2496 = vmatprep.mubr.msk.f32.mxu1 %vm641_vm1, %v1735_v2  ;;  %v2518_v7 = vld [vmem:[%s2609_s8 + $0x40] sm:$0xff] }
 0x189   : > { %v1704_v16 = vmax.f32 %v1672_v62, 0.0 }
 0x18b   : > { %v1736_v19 = vmin.f32 %v1704_v16, 6.0 }
 0x18d   : > { %2497 = vmatmul.mubr.msk.f32.gmra.mxu1 %vm641_vm1, %v1736_v19 }
 0x1b2   : > { %v2453_v30 = vpop.f32.mrf.mxu1 }
 0x1b3   : > { %v1914_v54 = vadd.f32 %v2453_v30, %v3601_v22 }
 0x1b4   : > { %v1908_v37 = vpop.f32.mrf.mxu1 }
 0x1b5   : > { %v2068_v13 = vmax.f32 %v1914_v54, 0.0  ;;  %v1909_v4 = vadd.f32 %v3601_v22, %v1908_v37 }
 0x1b7   : > { %v2100_v61 = vmin.f32 %v2068_v13, 6.0  ;;  %v2067_v47 = vmax.f32 %v1909_v4, 0.0  ;;  %v2519_v4 = vld [vmem:[%s2609_s8 + $0x58] sm:$0xff] }
 0x1b9   : > { %v2132_v1 = vadd.f32 %v2509_v36, %v2100_v61  ;;  %v2099_v63 = vmin.f32 %v2067_v47, 6.0  ;;  %v2520_v36 = vld [vmem:[%s2609_s8 + $0x50] sm:$0xff] }
 0x1ba   : > { %v2456_v35 = vpop.f32.mrf.mxu1 }
 0x1bb   : > { %2164 = vst.msk [vmem:[%s3610_s10 + $0x8] sm:$0xff] %vm319_vm0, %v2132_v1  ;;  %v2131_v33 = vadd.f32 %v2510_v3, %v2099_v63  ;;  %v1924_v44 = vadd.f32 %v2456_v35, %v3601_v22 }
 0x1bc   : > { %v1918_v49 = vpop.f32.mrf.mxu1 }
 0x1bd   : > { %2163 = vst.msk [vmem:[%s3610_s10] sm:$0xff] %vm319_vm0, %v2131_v33  ;;  %v2070_v18 = vmax.f32 %v1924_v44, 0.0  ;;  %v1919_v53 = vadd.f32 %v3601_v22, %v1918_v49 }
 0x1bf   : > { %v2102_v59 = vmin.f32 %v2070_v18, 6.0  ;;  %v2069_v45 = vmax.f32 %v1919_v53, 0.0  ;;  %v2521_v53 = vld [vmem:[%s2609_s8 + $0x68] sm:$0xff] }
 0x1c1   : > { %v2134_v46 = vadd.f32 %v2511_v15, %v2102_v59  ;;  %v2101_v34 = vmin.f32 %v2069_v45, 6.0  ;;  %v2522_v15 = vld [vmem:[%s2609_s8 + $0x60] sm:$0xff] }
 0x1c3   : > { %2166 = vst.msk [vmem:[%s3610_s10 + $0x18] sm:$0xff] %vm319_vm0, %v2134_v46  ;;  %v2133_v23 = vadd.f32 %v2512_v0, %v2101_v34 }
 0x1c5   : > { %2165 = vst.msk [vmem:[%s3610_s10 + $0x10] sm:$0xff] %vm319_vm0, %v2133_v23 }
 0x1ca   : > { %v2459_v42 = vpop.f32.mrf.mxu1 }
 0x1cb   : > { %v1934_v6 = vadd.f32 %v2459_v42, %v3601_v22 }
 0x1cc   : > { %v1928_v43 = vpop.f32.mrf.mxu1 }
 0x1cd   : > { %v2072_v12 = vmax.f32 %v1934_v6, 0.0  ;;  %v1929_v24 = vadd.f32 %v3601_v22, %v1928_v43 }
 0x1cf   : > { %v2104_v58 = vmin.f32 %v2072_v12, 6.0  ;;  %v2071_v31 = vmax.f32 %v1929_v24, 0.0  ;;  %v2523_v24 = vld [vmem:[%s2609_s8 + $0x78] sm:$0xff] }
 0x1d1   : > { %v2136_v26 = vadd.f32 %v2513_v32, %v2104_v58  ;;  %v2103_v55 = vmin.f32 %v2071_v31, 6.0  ;;  %v2524_v32 = vld [vmem:[%s2609_s8 + $0x70] sm:$0xff] }
 0x1d3   : > { %2168 = vst.msk [vmem:[%s3610_s10 + $0x28] sm:$0xff] %vm319_vm0, %v2136_v26  ;;  %v2135_v9 = vadd.f32 %v2514_v57, %v2103_v55  ;;  %v2462_v60 = vpop.f32.mrf.mxu1 }
 0x1d4   : > { %v1944_v39 = vadd.f32 %v2462_v60, %v3601_v22 }
 0x1d5   : > { %2167 = vst.msk [vmem:[%s3610_s10 + $0x20] sm:$0xff] %vm319_vm0, %v2135_v9  ;;  %v1938_v51 = vpop.f32.mrf.mxu1 }
 0x1d6   : > { %v2074_v56 = vmax.f32 %v1944_v39, 0.0  ;;  %v1939_v38 = vadd.f32 %v3601_v22, %v1938_v51 }
 0x1d8   : > { %v2106_v27 = vmin.f32 %v2074_v56, 6.0  ;;  %v2073_v28 = vmax.f32 %v1939_v38, 0.0  ;;  %v2525_v38 = vld [vmem:[%s2609_s8 + $0x88] sm:$0xff] }
 0x1da   : > { %v2138_v52 = vadd.f32 %v2515_v40, %v2106_v27  ;;  %v2105_v41 = vmin.f32 %v2073_v28, 6.0  ;;  %v2526_v40 = vld [vmem:[%s2609_s8 + $0x80] sm:$0xff] }
 0x1dc   : > { %2170 = vst.msk [vmem:[%s3610_s10 + $0x38] sm:$0xff] %vm319_vm0, %v2138_v52  ;;  %v2137_v17 = vadd.f32 %v2516_v20, %v2105_v41 }
 0x1de   : > { %v2465_v48 = vpop.f32.mrf.mxu1  ;;  %2169 = vst.msk [vmem:[%s3610_s10 + $0x30] sm:$0xff] %vm319_vm0, %v2137_v17 }
 0x1df   : > { %v1954_v5 = vadd.f32 %v2465_v48, %v3601_v22 }
 0x1e0   : > { %v1948_v11 = vpop.f32.mrf.mxu1 }
 0x1e1   : > { %v2076_v29 = vmax.f32 %v1954_v5, 0.0  ;;  %v1949_v50 = vadd.f32 %v3601_v22, %v1948_v11 }
 0x1e3   : > { %v2108_v14 = vmin.f32 %v2076_v29, 6.0  ;;  %v2075_v8 = vmax.f32 %v1949_v50, 0.0  ;;  %v2527_v50 = vld [vmem:[%s2609_s8 + $0x98] sm:$0xff] }
 0x1e5   : > { %v2140_v10 = vadd.f32 %v2517_v25, %v2108_v14  ;;  %v2107_v21 = vmin.f32 %v2075_v8, 6.0  ;;  %v2528_v25 = vld [vmem:[%s2609_s8 + $0x90] sm:$0xff] }
 0x1e7   : > { %2172 = vst.msk [vmem:[%s3610_s10 + $0x48] sm:$0xff] %vm319_vm0, %v2140_v10  ;;  %v2139_v2 = vadd.f32 %v2518_v7, %v2107_v21 }
 0x1e9   : > { %2171 = vst.msk [vmem:[%s3610_s10 + $0x40] sm:$0xff] %vm319_vm0, %v2139_v2  ;;  %v2468_v62 = vpop.f32.mrf.mxu1 }
 0x1ea   : > { %v1964_v16 = vadd.f32 %v2468_v62, %v3601_v22 }
 0x1eb   : > { %v1958_v19 = vpop.f32.mrf.mxu1 }
 0x1ec   : > { %v2078_v30 = vmax.f32 %v1964_v16, 0.0  ;;  %v1959_v54 = vadd.f32 %v3601_v22, %v1958_v19 }
 0x1ee   : > { %v2110_v37 = vmin.f32 %v2078_v30, 6.0  ;;  %v2077_v13 = vmax.f32 %v1959_v54, 0.0  ;;  %v2529_v54 = vld [vmem:[%s2609_s8 + $0xa8] sm:$0xff] }
 0x1f0   : > { %v2142_v61 = vadd.f32 %v2519_v4, %v2110_v37  ;;  %v2109_v47 = vmin.f32 %v2077_v13, 6.0  ;;  %v2530_v4 = vld [vmem:[%s2609_s8 + $0xa0] sm:$0xff] }
 0x1f2   : > { %2174 = vst.msk [vmem:[%s3610_s10 + $0x58] sm:$0xff] %vm319_vm0, %v2142_v61  ;;  %v2141_v1 = vadd.f32 %v2520_v36, %v2109_v47 }
 0x1f3   : > { %v2471_v63 = vpop.f32.mrf.mxu1 }
 0x1f4   : > { %2173 = vst.msk [vmem:[%s3610_s10 + $0x50] sm:$0xff] %vm319_vm0, %v2141_v1  ;;  %v1974_v35 = vadd.f32 %v2471_v63, %v3601_v22 }
 0x1f5   : > { %v1968_v3 = vpop.f32.mrf.mxu1 }
 0x1f6   : > { %v2080_v33 = vmax.f32 %v1974_v35, 0.0  ;;  %v1969_v44 = vadd.f32 %v3601_v22, %v1968_v3 }
 0x1f8   : > { %v2112_v49 = vmin.f32 %v2080_v33, 6.0  ;;  %v2079_v18 = vmax.f32 %v1969_v44, 0.0  ;;  %v2531_v44 = vld [vmem:[%s2609_s8 + $0xb8] sm:$0xff] }
 0x1fa   : > { %v2144_v59 = vadd.f32 %v2521_v53, %v2112_v49  ;;  %v2111_v45 = vmin.f32 %v2079_v18, 6.0  ;;  %v2532_v53 = vld [vmem:[%s2609_s8 + $0xb0] sm:$0xff] }
 0x1fc   : > { %2176 = vst.msk [vmem:[%s3610_s10 + $0x68] sm:$0xff] %vm319_vm0, %v2144_v59  ;;  %v2143_v46 = vadd.f32 %v2522_v15, %v2111_v45 }
 0x1fe   : > { %2175 = vst.msk [vmem:[%s3610_s10 + $0x60] sm:$0xff] %vm319_vm0, %v2143_v46  ;;  %v2474_v34 = vpop.f32.mrf.mxu1 }
 0x1ff   : > { %v1984_v0 = vadd.f32 %v2474_v34, %v3601_v22 }
 0x200   : > { %v1978_v23 = vpop.f32.mrf.mxu1 }
 0x201   : > { %v2082_v42 = vmax.f32 %v1984_v0, 0.0  ;;  %v1979_v6 = vadd.f32 %v3601_v22, %v1978_v23 }
 0x203   : > { %v2114_v43 = vmin.f32 %v2082_v42, 6.0  ;;  %v2081_v12 = vmax.f32 %v1979_v6, 0.0  ;;  %v2533_v6 = vld [vmem:[%s2609_s8 + $0xc8] sm:$0xff] }
 0x205   : > { %v2146_v58 = vadd.f32 %v2523_v24, %v2114_v43  ;;  %v2113_v31 = vmin.f32 %v2081_v12, 6.0  ;;  %v2534_v24 = vld [vmem:[%s2609_s8 + $0xc0] sm:$0xff] }
 0x207   : > { %2178 = vst.msk [vmem:[%s3610_s10 + $0x78] sm:$0xff] %vm319_vm0, %v2146_v58  ;;  %v2145_v26 = vadd.f32 %v2524_v32, %v2113_v31 }
 0x208   : > { %v2477_v55 = vpop.f32.mrf.mxu1 }
 0x209   : > { %2177 = vst.msk [vmem:[%s3610_s10 + $0x70] sm:$0xff] %vm319_vm0, %v2145_v26  ;;  %v1994_v57 = vadd.f32 %v2477_v55, %v3601_v22 }
 0x20a   : > { %v1988_v9 = vpop.f32.mrf.mxu1 }
 0x20b   : > { %v2084_v60 = vmax.f32 %v1994_v57, 0.0  ;;  %v1989_v39 = vadd.f32 %v3601_v22, %v1988_v9 }
 0x20d   : > { %v2116_v51 = vmin.f32 %v2084_v60, 6.0  ;;  %v2083_v56 = vmax.f32 %v1989_v39, 0.0  ;;  %v2535_v39 = vld [vmem:[%s2609_s8 + $0xd8] sm:$0xff] }
 0x20f   : > { %v2148_v27 = vadd.f32 %v2525_v38, %v2116_v51  ;;  %v2115_v28 = vmin.f32 %v2083_v56, 6.0  ;;  %v2536_v38 = vld [vmem:[%s2609_s8 + $0xd0] sm:$0xff] }
 0x211   : > { %2180 = vst.msk [vmem:[%s3610_s10 + $0x88] sm:$0xff] %vm319_vm0, %v2148_v27  ;;  %v2147_v52 = vadd.f32 %v2526_v40, %v2115_v28  ;;  %v2480_v41 = vpop.f32.mrf.mxu1 }
 0x212   : > { %v2004_v20 = vadd.f32 %v2480_v41, %v3601_v22 }
 0x213   : > { %2179 = vst.msk [vmem:[%s3610_s10 + $0x80] sm:$0xff] %vm319_vm0, %v2147_v52  ;;  %v1998_v17 = vpop.f32.mrf.mxu1 }
 0x214   : > { %v2086_v48 = vmax.f32 %v2004_v20, 0.0  ;;  %v1999_v5 = vadd.f32 %v3601_v22, %v1998_v17 }
 0x216   : > { %v2118_v11 = vmin.f32 %v2086_v48, 6.0  ;;  %v2085_v29 = vmax.f32 %v1999_v5, 0.0  ;;  %v2537_v5 = vld [vmem:[%s2609_s8 + $0xe8] sm:$0xff] }
 0x218   : > { %v2150_v14 = vadd.f32 %v2527_v50, %v2118_v11  ;;  %v2117_v8 = vmin.f32 %v2085_v29, 6.0  ;;  %v2538_v50 = vld [vmem:[%s2609_s8 + $0xe0] sm:$0xff] }
 0x21a   : > { %2182 = vst.msk [vmem:[%s3610_s10 + $0x98] sm:$0xff] %vm319_vm0, %v2150_v14  ;;  %v2149_v10 = vadd.f32 %v2528_v25, %v2117_v8 }
 0x21c   : > { %2181 = vst.msk [vmem:[%s3610_s10 + $0x90] sm:$0xff] %vm319_vm0, %v2149_v10  ;;  %v2483_v21 = vpop.f32.mrf.mxu1 }
 0x21d   : > { %v2014_v7 = vadd.f32 %v2483_v21, %v3601_v22 }
 0x21e   : > { %v2008_v2 = vpop.f32.mrf.mxu1 }
 0x21f   : > { %v2088_v62 = vmax.f32 %v2014_v7, 0.0  ;;  %v2009_v16 = vadd.f32 %v3601_v22, %v2008_v2 }
 0x221   : > { %v2120_v19 = vmin.f32 %v2088_v62, 6.0  ;;  %v2087_v30 = vmax.f32 %v2009_v16, 0.0  ;;  %v2539_v16 = vld [vmem:[%s2609_s8 + $0xf8] sm:$0xff] }
 0x223   : > { %v2152_v37 = vadd.f32 %v2529_v54, %v2120_v19  ;;  %v2119_v13 = vmin.f32 %v2087_v30, 6.0  ;;  %v2540_v54 = vld [vmem:[%s2609_s8 + $0xf0] sm:$0xff] }
 0x225   : > { %2184 = vst.msk [vmem:[%s3610_s10 + $0xa8] sm:$0xff] %vm319_vm0, %v2152_v37  ;;  %v2151_v61 = vadd.f32 %v2530_v4, %v2119_v13 }
 0x226   : > { %v2486_v47 = vpop.f32.mrf.mxu1 }
 0x227   : > { %2183 = vst.msk [vmem:[%s3610_s10 + $0xa0] sm:$0xff] %vm319_vm0, %v2151_v61  ;;  %v2024_v36 = vadd.f32 %v2486_v47, %v3601_v22 }
 0x228   : > { %v2018_v1 = vpop.f32.mrf.mxu1 }
 0x229   : > { %v2090_v63 = vmax.f32 %v2024_v36, 0.0  ;;  %v2019_v35 = vadd.f32 %v3601_v22, %v2018_v1 }
 0x22b   : > { %v2122_v3 = vmin.f32 %v2090_v63, 6.0  ;;  %v2089_v33 = vmax.f32 %v2019_v35, 0.0 }
 0x22d   : > { %v2154_v49 = vadd.f32 %v2531_v44, %v2122_v3  ;;  %v2121_v18 = vmin.f32 %v2089_v33, 6.0 }
 0x22f   : > { %2186 = vst.msk [vmem:[%s3610_s10 + $0xb8] sm:$0xff] %vm319_vm0, %v2154_v49  ;;  %v2153_v59 = vadd.f32 %v2532_v53, %v2121_v18  ;;  %v2489_v45 = vpop.f32.mrf.mxu1 }
 0x230   : > { %v2034_v15 = vadd.f32 %v2489_v45, %v3601_v22 }
 0x231   : > { %2185 = vst.msk [vmem:[%s3610_s10 + $0xb0] sm:$0xff] %vm319_vm0, %v2153_v59  ;;  %v2028_v46 = vpop.f32.mrf.mxu1 }
 0x232   : > { %v2092_v34 = vmax.f32 %v2034_v15, 0.0  ;;  %v2029_v0 = vadd.f32 %v3601_v22, %v2028_v46 }
 0x234   : > { %v2124_v23 = vmin.f32 %v2092_v34, 6.0  ;;  %v2091_v42 = vmax.f32 %v2029_v0, 0.0 }
 0x236   : > { %v2156_v43 = vadd.f32 %v2533_v6, %v2124_v23  ;;  %v2123_v12 = vmin.f32 %v2091_v42, 6.0 }
 0x238   : > { %2188 = vst.msk [vmem:[%s3610_s10 + $0xc8] sm:$0xff] %vm319_vm0, %v2156_v43  ;;  %v2155_v58 = vadd.f32 %v2534_v24, %v2123_v12 }
 0x23a   : > { %2187 = vst.msk [vmem:[%s3610_s10 + $0xc0] sm:$0xff] %vm319_vm0, %v2155_v58  ;;  %v2492_v31 = vpop.f32.mrf.mxu1 }
 0x23b   : > { %v2044_v32 = vadd.f32 %v2492_v31, %v3601_v22 }
 0x23c   : > { %v2038_v26 = vpop.f32.mrf.mxu1 }
 0x23d   : > { %v2094_v55 = vmax.f32 %v2044_v32, 0.0  ;;  %v2039_v57 = vadd.f32 %v3601_v22, %v2038_v26 }
 0x23f   : > { %v2126_v9 = vmin.f32 %v2094_v55, 6.0  ;;  %v2093_v60 = vmax.f32 %v2039_v57, 0.0 }
 0x241   : > { %v2158_v51 = vadd.f32 %v2535_v39, %v2126_v9  ;;  %v2125_v56 = vmin.f32 %v2093_v60, 6.0 }
 0x243   : > { %2190 = vst.msk [vmem:[%s3610_s10 + $0xd8] sm:$0xff] %vm319_vm0, %v2158_v51  ;;  %v2157_v27 = vadd.f32 %v2536_v38, %v2125_v56 }
 0x244   : > { %v2495_v28 = vpop.f32.mrf.mxu1 }
 0x245   : > { %2189 = vst.msk [vmem:[%s3610_s10 + $0xd0] sm:$0xff] %vm319_vm0, %v2157_v27  ;;  %v2054_v40 = vadd.f32 %v2495_v28, %v3601_v22 }
 0x246   : > { %v2048_v52 = vpop.f32.mrf.mxu1 }
 0x247   : > { %v2096_v41 = vmax.f32 %v2054_v40, 0.0  ;;  %v2049_v20 = vadd.f32 %v3601_v22, %v2048_v52 }
 0x249   : > { %v2128_v17 = vmin.f32 %v2096_v41, 6.0  ;;  %v2095_v48 = vmax.f32 %v2049_v20, 0.0 }
 0x24b   : > { %v2160_v11 = vadd.f32 %v2537_v5, %v2128_v17  ;;  %v2127_v29 = vmin.f32 %v2095_v48, 6.0 }
 0x24d   : > { %2192 = vst.msk [vmem:[%s3610_s10 + $0xe8] sm:$0xff] %vm319_vm0, %v2160_v11  ;;  %v2159_v14 = vadd.f32 %v2538_v50, %v2127_v29  ;;  %v2498_v8 = vpop.f32.mrf.mxu1 }
 0x24e   : > { %v2064_v25 = vadd.f32 %v2498_v8, %v3601_v22 }
 0x24f   : > { %2191 = vst.msk [vmem:[%s3610_s10 + $0xe0] sm:$0xff] %vm319_vm0, %v2159_v14  ;;  %v2058_v10 = vpop.f32.mrf.mxu1 }
 0x250   : > { %v2098_v21 = vmax.f32 %v2064_v25, 0.0  ;;  %v2059_v7 = vadd.f32 %v3601_v22, %v2058_v10 }
 0x252   : > { %v2130_v2 = vmin.f32 %v2098_v21, 6.0  ;;  %v2097_v62 = vmax.f32 %v2059_v7, 0.0 }
 0x254   : > { %v2162_v19 = vadd.f32 %v2539_v16, %v2130_v2  ;;  %v2129_v30 = vmin.f32 %v2097_v62, 6.0 }
 0x256   : > { %2194 = vst.msk [vmem:[%s3610_s10 + $0xf8] sm:$0xff] %vm319_vm0, %v2162_v19  ;;  %v2161_v37 = vadd.f32 %v2540_v54, %v2129_v30 }
 0x258   : > { %2193 = vst.msk [vmem:[%s3610_s10 + $0xf0] sm:$0xff] %vm319_vm0, %v2161_v37 }
 0x259 PF: > { %s17_s24 = sadd.s32 1, %s2547_s24  }
 0x25a   : > { %p14_p4 = scmp.ge.s32.totalorder %s17_s24, 4  }
 0x25c   :  { %16 = sbr.rel (!%p14_p4) target bundleno = 1 (0x1), region = 80 }

</bundles_post_ra>
